<compile_context>
chip_gen: v7x
topology: tpu7x:2x2x1
jax: 0.10.0
libtpu: 0.0.40
codegen_flags: <defaults>
</compile_context>

<pallas_src>
import functools

import jax
import jax.numpy as jnp
from jax import lax
from jax.experimental import pallas as pl
from jax.experimental.pallas import tpu as pltpu


H_K = 11       # h_kernel_size
V_K = 11       # v_kernel_size
POOL = 7       # avg-pool kernel
POOL_PAD = 3   # avg-pool padding


def _tree_sum(terms):
    """Pairwise (tree) reduction — short VALU dependency chain."""
    terms = list(terms)
    while len(terms) > 1:
        nxt = [terms[i] + terms[i + 1] for i in range(0, len(terms) - 1, 2)]
        if len(terms) % 2:
            nxt.append(terms[-1])
        terms = nxt
    return terms[0]


def _conv1x1(w_ref, act):
    """1x1 conv: w (Cout, Cin) applied to lane-dense activation (Cin, HWp)."""
    C = act.shape[0]
    if C <= 32:
        # Tiny channel count: unrolled VPU outer-product accumulation beats a
        # (C,C) x (C,HWp) MXU matmul (which would use <1% of the MXU).
        acc = w_ref[:, 0:1] * act[0:1, :]
        for c in range(1, C):
            acc = acc + w_ref[:, c:c + 1] * act[c:c + 1, :]
        return acc
    # TODO(synk): for production C (>=128), cast operands to bf16 for full-rate
    # MXU throughput (keep preferred_element_type=f32).
    return jnp.dot(w_ref[...], act, preferred_element_type=jnp.float32)


def caa_kernel(x_ref, widx_ref, hidx_ref,
               w1_ref, s1_ref, t1_ref, wh_ref, bh_ref, wv_ref, bv_ref,
               w2_ref, s2_ref, t2_ref, o_ref, *, H, W):
    C = x_ref.shape[1]
    HWp = x_ref.shape[2]
    x = x_ref[0].astype(jnp.float32)                 # (C, HWp), lane-dense

    # Per-position column/row indices (precomputed in the wrapper; avoids
    # in-kernel integer div/mod).  Broadcast once and reused by every mask.
    w_idx = jnp.broadcast_to(widx_ref[...], (C, HWp))
    h_idx = jnp.broadcast_to(hidx_ref[...], (C, HWp))

    def shift_w(a, d):
        # result[:, h*W + w] = a[:, h*W + (w + d)], zero where w+d outside [0, W)
        if d == 0:
            return a
        s = pltpu.roll(a, (-d) % HWp, axis=1)
        m = (w_idx < (W - d)) if d > 0 else (w_idx >= (-d))
        return jnp.where(m, s, 0.0)

    def shift_h(a, r):
        # result[:, h*W + w] = a[:, (h+r)*W + w], zero where h+r outside [0, H)
        if r == 0:
            return a
        s = pltpu.roll(a, (-r * W) % HWp, axis=1)
        m = (h_idx < (H - r)) if r > 0 else (h_idx >= (-r))
        return jnp.where(m, s, 0.0)

    # ---- AvgPool2d(7, stride=1, padding=3), count_include_pad=True (divisor 49)
    col = _tree_sum([shift_h(x, r) for r in range(-POOL_PAD, POOL_PAD + 1)])
    pooled = _tree_sum([shift_w(col, d) for d in range(-POOL_PAD, POOL_PAD + 1)])
    pooled = pooled * (1.0 / float(POOL * POOL))

    # ---- conv1: 1x1 conv (no bias) + folded BN + SiLU
    y = _conv1x1(w1_ref, pooled)
    y = y * s1_ref[...] + t1_ref[...]
    y = y * jax.nn.sigmoid(y)

    # ---- h_conv: depthwise (1, 11), padding (0, 5), bias
    h = _tree_sum([shift_w(y, k - H_K // 2) * wh_ref[:, k:k + 1]
                   for k in range(H_K)])
    h = h + bh_ref[...]

    # ---- v_conv: depthwise (11, 1), padding (5, 0), bias
    v = _tree_sum([shift_h(h, k - V_K // 2) * wv_ref[:, k:k + 1]
                   for k in range(V_K)])
    v = v + bv_ref[...]

    # ---- conv2: 1x1 conv (no bias) + folded BN + SiLU
    z = _conv1x1(w2_ref, v)
    z = z * s2_ref[...] + t2_ref[...]
    z = z * jax.nn.sigmoid(z)

    # ---- final Sigmoid (attention factor) — lane-dense, unmasked store
    o_ref[0] = jax.nn.sigmoid(z).astype(o_ref.dtype)


def caa_pallas(x_nchw, params):
    """x_nchw: (B, C, H, W) float32 -> attention factor (B, C, H, W)."""
    B, C, H, W = x_nchw.shape
    HW = H * W
    HWp = ((HW + 127) // 128) * 128   # lane-dense flat spatial axis

    # NCHW is already channel-major per batch -> flatten spatial, no transpose.
    x_flat = x_nchw.reshape(B, C, HW).astype(jnp.float32)
    if HWp != HW:
        x_flat = jnp.pad(x_flat, ((0, 0), (0, 0), (0, HWp - HW)))

    flat = jnp.arange(HWp, dtype=jnp.int32)
    w_idx = (flat % W).reshape(1, HWp)
    h_idx = (flat // W).reshape(1, HWp)

    (w1, s1, t1, wh, bh, wv, bv, w2, s2, t2) = params

    kernel = functools.partial(caa_kernel, H=H, W=W)
    full = lambda shape: pl.BlockSpec(shape, lambda b: (0, 0))

    # TODO(synk): for production feature-map sizes, add an H-row tile grid axis
    # (8-row halo: 3 for the pool + 5 for v_conv) so the working set fits v7x's
    # 64 MiB VMEM and both TensorCores get many grid steps even when B is small.
    out = pl.pallas_call(
        kernel,
        out_shape=jax.ShapeDtypeStruct((B, C, HWp), jnp.float32),
        grid_spec=pltpu.PrefetchScalarGridSpec(
            num_scalar_prefetch=0,
            grid=(B,),
            in_specs=[
                pl.BlockSpec((1, C, HWp), lambda b: (b, 0, 0)),   # x (flat)
                full((1, HWp)),      # w index of each flat position
                full((1, HWp)),      # h index of each flat position
                full((C, C)),        # conv1 weight (Cout, Cin)
                full((C, 1)),        # bn1 scale
                full((C, 1)),        # bn1 shift
                full((C, H_K)),      # h_conv depthwise weights
                full((C, 1)),        # h_conv bias
                full((C, V_K)),      # v_conv depthwise weights
                full((C, 1)),        # v_conv bias
                full((C, C)),        # conv2 weight (Cout, Cin)
                full((C, 1)),        # bn2 scale
                full((C, 1)),        # bn2 shift
            ],
            out_specs=pl.BlockSpec((1, C, HWp), lambda b: (b, 0, 0)),
        ),
        compiler_params=pltpu.CompilerParams(
            dimension_semantics=("parallel",)),
    )(x_flat, w_idx, h_idx, w1, s1, t1, wh, bh, wv, bv, w2, s2, t2)

    if HWp != HW:
        out = out[:, :, :HW]
    return out.reshape(B, C, H, W)


def make_params(key, C):
    """Deterministic synthetic parameters (same shapes as the PyTorch module)."""
    ks = jax.random.split(key, 12)
    eps = 1e-3  # norm_cfg eps
    # conv1: Conv2d(C, C, 1) no bias + BN + SiLU
    w1 = jax.random.normal(ks[0], (C, C), jnp.float32) * 0.2       # (out, in)
    g1 = 1.0 + 0.1 * jax.random.normal(ks[1], (C,), jnp.float32)
    b1 = 0.1 * jax.random.normal(ks[2], (C,), jnp.float32)
    m1 = 0.05 * jax.random.normal(ks[3], (C,), jnp.float32)
    v1 = 1.0 + 0.1 * jnp.abs(jax.random.normal(ks[4], (C,), jnp.float32))
    # h_conv: depthwise Conv2d(C, C, (1,11)) with bias
    wh = jax.random.normal(ks[5], (C, H_K), jnp.float32) * 0.2
    bh = 0.1 * jax.random.normal(ks[6], (C,), jnp.float32)
    # v_conv: depthwise Conv2d(C, C, (11,1)) with bias
    wv = jax.random.normal(ks[7], (C, V_K), jnp.float32) * 0.2
    bv = 0.1 * jax.random.normal(ks[8], (C,), jnp.float32)
    # conv2: Conv2d(C, C, 1) no bias + BN + SiLU
    w2 = jax.random.normal(ks[9], (C, C), jnp.float32) * 0.2
    g2 = 1.0 + 0.1 * jax.random.normal(ks[10], (C,), jnp.float32)
    b2 = 0.1 * jax.random.normal(ks[11], (C,), jnp.float32)
    m2 = jnp.zeros((C,), jnp.float32)
    v2 = jnp.ones((C,), jnp.float32)

    # fold BN into per-channel scale/shift
    s1 = g1 / jnp.sqrt(v1 + eps)
    t1 = b1 - m1 * s1
    s2 = g2 / jnp.sqrt(v2 + eps)
    t2 = b2 - m2 * s2

    raw = dict(w1=w1, wh=wh, bh=bh, wv=wv, bv=bv, w2=w2,
               s1=s1, t1=t1, s2=s2, t2=t2)
    kernel_params = (
        w1,                               # (Cout, Cin)
        s1.reshape(C, 1), t1.reshape(C, 1),
        wh,                               # (C, 11)
        bh.reshape(C, 1),
        wv,                               # (C, 11)
        bv.reshape(C, 1),
        w2,                               # (Cout, Cin)
        s2.reshape(C, 1), t2.reshape(C, 1),
    )
    return raw, kernel_params


def caa_ref(x, p):
    """Pure-JAX NCHW reference mirroring the PyTorch forward."""
    B, C, H, W = x.shape
    x = x.astype(jnp.float32)
    # avg pool 7x7, stride 1, pad 3 (count_include_pad=True)
    xp = jnp.pad(x, ((0, 0), (0, 0), (POOL_PAD, POOL_PAD), (POOL_PAD, POOL_PAD)))
    pooled = jnp.zeros_like(x)
    for i in range(POOL):
        for j in range(POOL):
            pooled = pooled + xp[:, :, i:i + H, j:j + W]
    pooled = pooled / float(POOL * POOL)
    # conv1 + BN + SiLU
    y = jnp.einsum('bchw,oc->bohw', pooled, p['w1'])
    y = y * p['s1'][None, :, None, None] + p['t1'][None, :, None, None]
    y = y * jax.nn.sigmoid(y)
    # h_conv (depthwise 1x11)
    yp = jnp.pad(y, ((0, 0), (0, 0), (0, 0), (H_K // 2, H_K // 2)))
    h = jnp.zeros_like(y)
    for k in range(H_K):
        h = h + yp[:, :, :, k:k + W] * p['wh'][:, k][None, :, None, None]
    h = h + p['bh'][None, :, None, None]
    # v_conv (depthwise 11x1)
    hp = jnp.pad(h, ((0, 0), (0, 0), (V_K // 2, V_K // 2), (0, 0)))
    v = jnp.zeros_like(h)
    for k in range(V_K):
        v = v + hp[:, :, k:k + H, :] * p['wv'][:, k][None, :, None, None]
    v = v + p['bv'][None, :, None, None]
    # conv2 + BN + SiLU
    z = jnp.einsum('bchw,oc->bohw', v, p['w2'])
    z = z * p['s2'][None, :, None, None] + p['t2'][None, :, None, None]
    z = z * jax.nn.sigmoid(z)
    return jax.nn.sigmoid(z)


if __name__ == "__main__":
    key = jax.random.PRNGKey(0)
    k_x, k_p = jax.random.split(key)

    B, C, H, W = 2, 8, 16, 16
    x = jax.random.normal(k_x, (B, C, H, W), jnp.float32)

    raw_params, kernel_params = make_params(k_p, C)

    out = caa_pallas(x, kernel_params)
    out = jax.block_until_ready(out)

    ref = jax.block_until_ready(caa_ref(x, raw_params))
    assert out.shape == (B, C, H, W)
    assert jnp.allclose(out, ref, rtol=1e-4, atol=1e-5), (
        float(jnp.max(jnp.abs(out - ref))))

    print("KERNEL_OK")
</pallas_src>

<mosaic_0001>
module attributes {stable_mosaic.version = 11 : i64} {
  func.func @caa_kernel(%arg0: i32, %arg1: memref<1x8x256xf32, #tpu.memory_space<vmem>>, %arg2: memref<1x256xi32, #tpu.memory_space<vmem>>, %arg3: memref<1x256xi32, #tpu.memory_space<vmem>>, %arg4: memref<8x8xf32, #tpu.memory_space<vmem>>, %arg5: memref<8x1xf32, #tpu.memory_space<vmem>>, %arg6: memref<8x1xf32, #tpu.memory_space<vmem>>, %arg7: memref<8x11xf32, #tpu.memory_space<vmem>>, %arg8: memref<8x1xf32, #tpu.memory_space<vmem>>, %arg9: memref<8x11xf32, #tpu.memory_space<vmem>>, %arg10: memref<8x1xf32, #tpu.memory_space<vmem>>, %arg11: memref<8x8xf32, #tpu.memory_space<vmem>>, %arg12: memref<8x1xf32, #tpu.memory_space<vmem>>, %arg13: memref<8x1xf32, #tpu.memory_space<vmem>>, %arg14: memref<1x8x256xf32, #tpu.memory_space<vmem>>) attributes {dimension_semantics = [#tpu.dimension_semantics<parallel>], iteration_bounds = array<i64: 2>, scalar_prefetch = 0 : i64, scratch_operands = 0 : i64, tpu.core_type = #tpu.core_type<tc>, window_params = [{transform_indices = @transform_0, window_bounds = array<i64: 1, 8, 256>}, {pipeline_mode = #tpu.pipeline_mode<synchronous>, transform_indices = @transform_1, window_bounds = array<i64: 1, 256>}, {pipeline_mode = #tpu.pipeline_mode<synchronous>, transform_indices = @transform_2, window_bounds = array<i64: 1, 256>}, {pipeline_mode = #tpu.pipeline_mode<synchronous>, transform_indices = @transform_3, window_bounds = array<i64: 8, 8>}, {pipeline_mode = #tpu.pipeline_mode<synchronous>, transform_indices = @transform_4, window_bounds = array<i64: 8, 1>}, {pipeline_mode = #tpu.pipeline_mode<synchronous>, transform_indices = @transform_5, window_bounds = array<i64: 8, 1>}, {pipeline_mode = #tpu.pipeline_mode<synchronous>, transform_indices = @transform_6, window_bounds = array<i64: 8, 11>}, {pipeline_mode = #tpu.pipeline_mode<synchronous>, transform_indices = @transform_7, window_bounds = array<i64: 8, 1>}, {pipeline_mode = #tpu.pipeline_mode<synchronous>, transform_indices = @transform_8, window_bounds = array<i64: 8, 11>}, {pipeline_mode = #tpu.pipeline_mode<synchronous>, transform_indices = @transform_9, window_bounds = array<i64: 8, 1>}, {pipeline_mode = #tpu.pipeline_mode<synchronous>, transform_indices = @transform_10, window_bounds = array<i64: 8, 8>}, {pipeline_mode = #tpu.pipeline_mode<synchronous>, transform_indices = @transform_11, window_bounds = array<i64: 8, 1>}, {pipeline_mode = #tpu.pipeline_mode<synchronous>, transform_indices = @transform_12, window_bounds = array<i64: 8, 1>}, {transform_indices = @transform_13, window_bounds = array<i64: 1, 8, 256>}]} {
    %c0 = arith.constant 0 : index
    %c0_0 = arith.constant 0 : index
    %c0_1 = arith.constant 0 : index
    %0 = vector.load %arg1[%c0, %c0_0, %c0_1] : memref<1x8x256xf32, #tpu.memory_space<vmem>>, vector<1x8x256xf32>
    %1 = vector.shape_cast %0 : vector<1x8x256xf32> to vector<8x256xf32>
    %c0_2 = arith.constant 0 : index
    %c0_3 = arith.constant 0 : index
    %2 = vector.load %arg2[%c0_2, %c0_3] : memref<1x256xi32, #tpu.memory_space<vmem>>, vector<1x256xi32>
    %3 = vector.shape_cast %2 : vector<1x256xi32> to vector<1x256xi32>
    %4 = vector.broadcast %3 : vector<1x256xi32> to vector<8x256xi32>
    %c0_4 = arith.constant 0 : index
    %c0_5 = arith.constant 0 : index
    %5 = vector.load %arg3[%c0_4, %c0_5] : memref<1x256xi32, #tpu.memory_space<vmem>>, vector<1x256xi32>
    %6 = vector.shape_cast %5 : vector<1x256xi32> to vector<1x256xi32>
    %7 = vector.broadcast %6 : vector<1x256xi32> to vector<8x256xi32>
    %c48_i32 = arith.constant 48 : i32
    %8 = tpu.dynamic_rotate %1 by %c48_i32 dim 1 : vector<8x256xf32>, i32 -> vector<8x256xf32>
    %c3_i32 = arith.constant 3 : i32
    %9 = vector.broadcast %c3_i32 : i32 to vector<8x256xi32>
    %10 = arith.cmpi sge, %7, %9 : vector<8x256xi32>
    %cst = arith.constant 0.000000e+00 : f32
    %11 = vector.broadcast %cst : f32 to vector<8x256xf32>
    %12 = arith.select %10, %8, %11 : vector<8x256xi1>, vector<8x256xf32>
    %c32_i32 = arith.constant 32 : i32
    %13 = tpu.dynamic_rotate %1 by %c32_i32 dim 1 : vector<8x256xf32>, i32 -> vector<8x256xf32>
    %c2_i32 = arith.constant 2 : i32
    %14 = vector.broadcast %c2_i32 : i32 to vector<8x256xi32>
    %15 = arith.cmpi sge, %7, %14 : vector<8x256xi32>
    %cst_6 = arith.constant 0.000000e+00 : f32
    %16 = vector.broadcast %cst_6 : f32 to vector<8x256xf32>
    %17 = arith.select %15, %13, %16 : vector<8x256xi1>, vector<8x256xf32>
    %c16_i32 = arith.constant 16 : i32
    %18 = tpu.dynamic_rotate %1 by %c16_i32 dim 1 : vector<8x256xf32>, i32 -> vector<8x256xf32>
    %c1_i32 = arith.constant 1 : i32
    %19 = vector.broadcast %c1_i32 : i32 to vector<8x256xi32>
    %20 = arith.cmpi sge, %7, %19 : vector<8x256xi32>
    %cst_7 = arith.constant 0.000000e+00 : f32
    %21 = vector.broadcast %cst_7 : f32 to vector<8x256xf32>
    %22 = arith.select %20, %18, %21 : vector<8x256xi1>, vector<8x256xf32>
    %c240_i32 = arith.constant 240 : i32
    %23 = tpu.dynamic_rotate %1 by %c240_i32 dim 1 : vector<8x256xf32>, i32 -> vector<8x256xf32>
    %c15_i32 = arith.constant 15 : i32
    %24 = vector.broadcast %c15_i32 : i32 to vector<8x256xi32>
    %25 = arith.cmpi slt, %7, %24 : vector<8x256xi32>
    %cst_8 = arith.constant 0.000000e+00 : f32
    %26 = vector.broadcast %cst_8 : f32 to vector<8x256xf32>
    %27 = arith.select %25, %23, %26 : vector<8x256xi1>, vector<8x256xf32>
    %c224_i32 = arith.constant 224 : i32
    %28 = tpu.dynamic_rotate %1 by %c224_i32 dim 1 : vector<8x256xf32>, i32 -> vector<8x256xf32>
    %c14_i32 = arith.constant 14 : i32
    %29 = vector.broadcast %c14_i32 : i32 to vector<8x256xi32>
    %30 = arith.cmpi slt, %7, %29 : vector<8x256xi32>
    %cst_9 = arith.constant 0.000000e+00 : f32
    %31 = vector.broadcast %cst_9 : f32 to vector<8x256xf32>
    %32 = arith.select %30, %28, %31 : vector<8x256xi1>, vector<8x256xf32>
    %c208_i32 = arith.constant 208 : i32
    %33 = tpu.dynamic_rotate %1 by %c208_i32 dim 1 : vector<8x256xf32>, i32 -> vector<8x256xf32>
    %c13_i32 = arith.constant 13 : i32
    %34 = vector.broadcast %c13_i32 : i32 to vector<8x256xi32>
    %35 = arith.cmpi slt, %7, %34 : vector<8x256xi32>
    %cst_10 = arith.constant 0.000000e+00 : f32
    %36 = vector.broadcast %cst_10 : f32 to vector<8x256xf32>
    %37 = arith.select %35, %33, %36 : vector<8x256xi1>, vector<8x256xf32>
    %38 = arith.addf %12, %17 : vector<8x256xf32>
    %39 = arith.addf %22, %1 : vector<8x256xf32>
    %40 = arith.addf %27, %32 : vector<8x256xf32>
    %41 = arith.addf %38, %39 : vector<8x256xf32>
    %42 = arith.addf %40, %37 : vector<8x256xf32>
    %43 = arith.addf %41, %42 : vector<8x256xf32>
    %c3_i32_11 = arith.constant 3 : i32
    %44 = tpu.dynamic_rotate %43 by %c3_i32_11 dim 1 : vector<8x256xf32>, i32 -> vector<8x256xf32>
    %c3_i32_12 = arith.constant 3 : i32
    %45 = vector.broadcast %c3_i32_12 : i32 to vector<8x256xi32>
    %46 = arith.cmpi sge, %4, %45 : vector<8x256xi32>
    %cst_13 = arith.constant 0.000000e+00 : f32
    %47 = vector.broadcast %cst_13 : f32 to vector<8x256xf32>
    %48 = arith.select %46, %44, %47 : vector<8x256xi1>, vector<8x256xf32>
    %c2_i32_14 = arith.constant 2 : i32
    %49 = tpu.dynamic_rotate %43 by %c2_i32_14 dim 1 : vector<8x256xf32>, i32 -> vector<8x256xf32>
    %c2_i32_15 = arith.constant 2 : i32
    %50 = vector.broadcast %c2_i32_15 : i32 to vector<8x256xi32>
    %51 = arith.cmpi sge, %4, %50 : vector<8x256xi32>
    %cst_16 = arith.constant 0.000000e+00 : f32
    %52 = vector.broadcast %cst_16 : f32 to vector<8x256xf32>
    %53 = arith.select %51, %49, %52 : vector<8x256xi1>, vector<8x256xf32>
    %c1_i32_17 = arith.constant 1 : i32
    %54 = tpu.dynamic_rotate %43 by %c1_i32_17 dim 1 : vector<8x256xf32>, i32 -> vector<8x256xf32>
    %c1_i32_18 = arith.constant 1 : i32
    %55 = vector.broadcast %c1_i32_18 : i32 to vector<8x256xi32>
    %56 = arith.cmpi sge, %4, %55 : vector<8x256xi32>
    %cst_19 = arith.constant 0.000000e+00 : f32
    %57 = vector.broadcast %cst_19 : f32 to vector<8x256xf32>
    %58 = arith.select %56, %54, %57 : vector<8x256xi1>, vector<8x256xf32>
    %c255_i32 = arith.constant 255 : i32
    %59 = tpu.dynamic_rotate %43 by %c255_i32 dim 1 : vector<8x256xf32>, i32 -> vector<8x256xf32>
    %c15_i32_20 = arith.constant 15 : i32
    %60 = vector.broadcast %c15_i32_20 : i32 to vector<8x256xi32>
    %61 = arith.cmpi slt, %4, %60 : vector<8x256xi32>
    %cst_21 = arith.constant 0.000000e+00 : f32
    %62 = vector.broadcast %cst_21 : f32 to vector<8x256xf32>
    %63 = arith.select %61, %59, %62 : vector<8x256xi1>, vector<8x256xf32>
    %c254_i32 = arith.constant 254 : i32
    %64 = tpu.dynamic_rotate %43 by %c254_i32 dim 1 : vector<8x256xf32>, i32 -> vector<8x256xf32>
    %c14_i32_22 = arith.constant 14 : i32
    %65 = vector.broadcast %c14_i32_22 : i32 to vector<8x256xi32>
    %66 = arith.cmpi slt, %4, %65 : vector<8x256xi32>
    %cst_23 = arith.constant 0.000000e+00 : f32
    %67 = vector.broadcast %cst_23 : f32 to vector<8x256xf32>
    %68 = arith.select %66, %64, %67 : vector<8x256xi1>, vector<8x256xf32>
    %c253_i32 = arith.constant 253 : i32
    %69 = tpu.dynamic_rotate %43 by %c253_i32 dim 1 : vector<8x256xf32>, i32 -> vector<8x256xf32>
    %c13_i32_24 = arith.constant 13 : i32
    %70 = vector.broadcast %c13_i32_24 : i32 to vector<8x256xi32>
    %71 = arith.cmpi slt, %4, %70 : vector<8x256xi32>
    %cst_25 = arith.constant 0.000000e+00 : f32
    %72 = vector.broadcast %cst_25 : f32 to vector<8x256xf32>
    %73 = arith.select %71, %69, %72 : vector<8x256xi1>, vector<8x256xf32>
    %74 = arith.addf %48, %53 : vector<8x256xf32>
    %75 = arith.addf %58, %43 : vector<8x256xf32>
    %76 = arith.addf %63, %68 : vector<8x256xf32>
    %77 = arith.addf %74, %75 : vector<8x256xf32>
    %78 = arith.addf %76, %73 : vector<8x256xf32>
    %79 = arith.addf %77, %78 : vector<8x256xf32>
    %cst_26 = arith.constant 0.0204081628 : f32
    %80 = vector.broadcast %cst_26 : f32 to vector<8x256xf32>
    %81 = arith.mulf %79, %80 : vector<8x256xf32>
    %c0_27 = arith.constant 0 : index
    %c0_28 = arith.constant 0 : index
    %82 = vector.load %arg4[%c0_27, %c0_28] : memref<8x8xf32, #tpu.memory_space<vmem>>, vector<8x1xf32>
    %83 = vector.extract_strided_slice %81 {offsets = [0, 0], sizes = [1, 256], strides = [1, 1]} : vector<8x256xf32> to vector<1x256xf32>
    %84 = vector.broadcast %82 : vector<8x1xf32> to vector<8x256xf32>
    %85 = vector.broadcast %83 : vector<1x256xf32> to vector<8x256xf32>
    %86 = arith.mulf %84, %85 : vector<8x256xf32>
    %c0_29 = arith.constant 0 : index
    %c1 = arith.constant 1 : index
    %87 = vector.load %arg4[%c0_29, %c1] : memref<8x8xf32, #tpu.memory_space<vmem>>, vector<8x1xf32>
    %88 = vector.extract_strided_slice %81 {offsets = [1, 0], sizes = [1, 256], strides = [1, 1]} : vector<8x256xf32> to vector<1x256xf32>
    %89 = vector.broadcast %87 : vector<8x1xf32> to vector<8x256xf32>
    %90 = vector.broadcast %88 : vector<1x256xf32> to vector<8x256xf32>
    %91 = arith.mulf %89, %90 : vector<8x256xf32>
    %92 = arith.addf %86, %91 : vector<8x256xf32>
    %c0_30 = arith.constant 0 : index
    %c2 = arith.constant 2 : index
    %93 = vector.load %arg4[%c0_30, %c2] : memref<8x8xf32, #tpu.memory_space<vmem>>, vector<8x1xf32>
    %94 = vector.extract_strided_slice %81 {offsets = [2, 0], sizes = [1, 256], strides = [1, 1]} : vector<8x256xf32> to vector<1x256xf32>
    %95 = vector.broadcast %93 : vector<8x1xf32> to vector<8x256xf32>
    %96 = vector.broadcast %94 : vector<1x256xf32> to vector<8x256xf32>
    %97 = arith.mulf %95, %96 : vector<8x256xf32>
    %98 = arith.addf %92, %97 : vector<8x256xf32>
    %c0_31 = arith.constant 0 : index
    %c3 = arith.constant 3 : index
    %99 = vector.load %arg4[%c0_31, %c3] : memref<8x8xf32, #tpu.memory_space<vmem>>, vector<8x1xf32>
    %100 = vector.extract_strided_slice %81 {offsets = [3, 0], sizes = [1, 256], strides = [1, 1]} : vector<8x256xf32> to vector<1x256xf32>
    %101 = vector.broadcast %99 : vector<8x1xf32> to vector<8x256xf32>
    %102 = vector.broadcast %100 : vector<1x256xf32> to vector<8x256xf32>
    %103 = arith.mulf %101, %102 : vector<8x256xf32>
    %104 = arith.addf %98, %103 : vector<8x256xf32>
    %c0_32 = arith.constant 0 : index
    %c4 = arith.constant 4 : index
    %105 = vector.load %arg4[%c0_32, %c4] : memref<8x8xf32, #tpu.memory_space<vmem>>, vector<8x1xf32>
    %106 = vector.extract_strided_slice %81 {offsets = [4, 0], sizes = [1, 256], strides = [1, 1]} : vector<8x256xf32> to vector<1x256xf32>
    %107 = vector.broadcast %105 : vector<8x1xf32> to vector<8x256xf32>
    %108 = vector.broadcast %106 : vector<1x256xf32> to vector<8x256xf32>
    %109 = arith.mulf %107, %108 : vector<8x256xf32>
    %110 = arith.addf %104, %109 : vector<8x256xf32>
    %c0_33 = arith.constant 0 : index
    %c5 = arith.constant 5 : index
    %111 = vector.load %arg4[%c0_33, %c5] : memref<8x8xf32, #tpu.memory_space<vmem>>, vector<8x1xf32>
    %112 = vector.extract_strided_slice %81 {offsets = [5, 0], sizes = [1, 256], strides = [1, 1]} : vector<8x256xf32> to vector<1x256xf32>
    %113 = vector.broadcast %111 : vector<8x1xf32> to vector<8x256xf32>
    %114 = vector.broadcast %112 : vector<1x256xf32> to vector<8x256xf32>
    %115 = arith.mulf %113, %114 : vector<8x256xf32>
    %116 = arith.addf %110, %115 : vector<8x256xf32>
    %c0_34 = arith.constant 0 : index
    %c6 = arith.constant 6 : index
    %117 = vector.load %arg4[%c0_34, %c6] : memref<8x8xf32, #tpu.memory_space<vmem>>, vector<8x1xf32>
    %118 = vector.extract_strided_slice %81 {offsets = [6, 0], sizes = [1, 256], strides = [1, 1]} : vector<8x256xf32> to vector<1x256xf32>
    %119 = vector.broadcast %117 : vector<8x1xf32> to vector<8x256xf32>
    %120 = vector.broadcast %118 : vector<1x256xf32> to vector<8x256xf32>
    %121 = arith.mulf %119, %120 : vector<8x256xf32>
    %122 = arith.addf %116, %121 : vector<8x256xf32>
    %c0_35 = arith.constant 0 : index
    %c7 = arith.constant 7 : index
    %123 = vector.load %arg4[%c0_35, %c7] : memref<8x8xf32, #tpu.memory_space<vmem>>, vector<8x1xf32>
    %124 = vector.extract_strided_slice %81 {offsets = [7, 0], sizes = [1, 256], strides = [1, 1]} : vector<8x256xf32> to vector<1x256xf32>
    %125 = vector.broadcast %123 : vector<8x1xf32> to vector<8x256xf32>
    %126 = vector.broadcast %124 : vector<1x256xf32> to vector<8x256xf32>
    %127 = arith.mulf %125, %126 : vector<8x256xf32>
    %128 = arith.addf %122, %127 : vector<8x256xf32>
    %c0_36 = arith.constant 0 : index
    %c0_37 = arith.constant 0 : index
    %129 = vector.load %arg5[%c0_36, %c0_37] : memref<8x1xf32, #tpu.memory_space<vmem>>, vector<8x1xf32>
    %130 = vector.broadcast %129 : vector<8x1xf32> to vector<8x256xf32>
    %131 = arith.mulf %128, %130 : vector<8x256xf32>
    %c0_38 = arith.constant 0 : index
    %c0_39 = arith.constant 0 : index
    %132 = vector.load %arg6[%c0_38, %c0_39] : memref<8x1xf32, #tpu.memory_space<vmem>>, vector<8x1xf32>
    %133 = vector.broadcast %132 : vector<8x1xf32> to vector<8x256xf32>
    %134 = arith.addf %131, %133 : vector<8x256xf32>
    %135 = arith.negf %134 : vector<8x256xf32>
    %136 = math.exp %135 : vector<8x256xf32>
    %cst_40 = arith.constant 1.000000e+00 : f32
    %137 = vector.broadcast %cst_40 : f32 to vector<8x256xf32>
    %138 = arith.addf %137, %136 : vector<8x256xf32>
    %139 = arith.divf %137, %138 : vector<8x256xf32>
    %140 = arith.mulf %134, %139 : vector<8x256xf32>
    %c5_i32 = arith.constant 5 : i32
    %141 = tpu.dynamic_rotate %140 by %c5_i32 dim 1 : vector<8x256xf32>, i32 -> vector<8x256xf32>
    %c5_i32_41 = arith.constant 5 : i32
    %142 = vector.broadcast %c5_i32_41 : i32 to vector<8x256xi32>
    %143 = arith.cmpi sge, %4, %142 : vector<8x256xi32>
    %cst_42 = arith.constant 0.000000e+00 : f32
    %144 = vector.broadcast %cst_42 : f32 to vector<8x256xf32>
    %145 = arith.select %143, %141, %144 : vector<8x256xi1>, vector<8x256xf32>
    %c0_43 = arith.constant 0 : index
    %c0_44 = arith.constant 0 : index
    %146 = vector.load %arg7[%c0_43, %c0_44] : memref<8x11xf32, #tpu.memory_space<vmem>>, vector<8x1xf32>
    %147 = vector.broadcast %146 : vector<8x1xf32> to vector<8x256xf32>
    %148 = arith.mulf %145, %147 : vector<8x256xf32>
    %c4_i32 = arith.constant 4 : i32
    %149 = tpu.dynamic_rotate %140 by %c4_i32 dim 1 : vector<8x256xf32>, i32 -> vector<8x256xf32>
    %c4_i32_45 = arith.constant 4 : i32
    %150 = vector.broadcast %c4_i32_45 : i32 to vector<8x256xi32>
    %151 = arith.cmpi sge, %4, %150 : vector<8x256xi32>
    %cst_46 = arith.constant 0.000000e+00 : f32
    %152 = vector.broadcast %cst_46 : f32 to vector<8x256xf32>
    %153 = arith.select %151, %149, %152 : vector<8x256xi1>, vector<8x256xf32>
    %c0_47 = arith.constant 0 : index
    %c1_48 = arith.constant 1 : index
    %154 = vector.load %arg7[%c0_47, %c1_48] : memref<8x11xf32, #tpu.memory_space<vmem>>, vector<8x1xf32>
    %155 = vector.broadcast %154 : vector<8x1xf32> to vector<8x256xf32>
    %156 = arith.mulf %153, %155 : vector<8x256xf32>
    %c3_i32_49 = arith.constant 3 : i32
    %157 = tpu.dynamic_rotate %140 by %c3_i32_49 dim 1 : vector<8x256xf32>, i32 -> vector<8x256xf32>
    %c3_i32_50 = arith.constant 3 : i32
    %158 = vector.broadcast %c3_i32_50 : i32 to vector<8x256xi32>
    %159 = arith.cmpi sge, %4, %158 : vector<8x256xi32>
    %cst_51 = arith.constant 0.000000e+00 : f32
    %160 = vector.broadcast %cst_51 : f32 to vector<8x256xf32>
    %161 = arith.select %159, %157, %160 : vector<8x256xi1>, vector<8x256xf32>
    %c0_52 = arith.constant 0 : index
    %c2_53 = arith.constant 2 : index
    %162 = vector.load %arg7[%c0_52, %c2_53] : memref<8x11xf32, #tpu.memory_space<vmem>>, vector<8x1xf32>
    %163 = vector.broadcast %162 : vector<8x1xf32> to vector<8x256xf32>
    %164 = arith.mulf %161, %163 : vector<8x256xf32>
    %c2_i32_54 = arith.constant 2 : i32
    %165 = tpu.dynamic_rotate %140 by %c2_i32_54 dim 1 : vector<8x256xf32>, i32 -> vector<8x256xf32>
    %c2_i32_55 = arith.constant 2 : i32
    %166 = vector.broadcast %c2_i32_55 : i32 to vector<8x256xi32>
    %167 = arith.cmpi sge, %4, %166 : vector<8x256xi32>
    %cst_56 = arith.constant 0.000000e+00 : f32
    %168 = vector.broadcast %cst_56 : f32 to vector<8x256xf32>
    %169 = arith.select %167, %165, %168 : vector<8x256xi1>, vector<8x256xf32>
    %c0_57 = arith.constant 0 : index
    %c3_58 = arith.constant 3 : index
    %170 = vector.load %arg7[%c0_57, %c3_58] : memref<8x11xf32, #tpu.memory_space<vmem>>, vector<8x1xf32>
    %171 = vector.broadcast %170 : vector<8x1xf32> to vector<8x256xf32>
    %172 = arith.mulf %169, %171 : vector<8x256xf32>
    %c1_i32_59 = arith.constant 1 : i32
    %173 = tpu.dynamic_rotate %140 by %c1_i32_59 dim 1 : vector<8x256xf32>, i32 -> vector<8x256xf32>
    %c1_i32_60 = arith.constant 1 : i32
    %174 = vector.broadcast %c1_i32_60 : i32 to vector<8x256xi32>
    %175 = arith.cmpi sge, %4, %174 : vector<8x256xi32>
    %cst_61 = arith.constant 0.000000e+00 : f32
    %176 = vector.broadcast %cst_61 : f32 to vector<8x256xf32>
    %177 = arith.select %175, %173, %176 : vector<8x256xi1>, vector<8x256xf32>
    %c0_62 = arith.constant 0 : index
    %c4_63 = arith.constant 4 : index
    %178 = vector.load %arg7[%c0_62, %c4_63] : memref<8x11xf32, #tpu.memory_space<vmem>>, vector<8x1xf32>
    %179 = vector.broadcast %178 : vector<8x1xf32> to vector<8x256xf32>
    %180 = arith.mulf %177, %179 : vector<8x256xf32>
    %c0_64 = arith.constant 0 : index
    %c5_65 = arith.constant 5 : index
    %181 = vector.load %arg7[%c0_64, %c5_65] : memref<8x11xf32, #tpu.memory_space<vmem>>, vector<8x1xf32>
    %182 = vector.broadcast %181 : vector<8x1xf32> to vector<8x256xf32>
    %183 = arith.mulf %140, %182 : vector<8x256xf32>
    %c255_i32_66 = arith.constant 255 : i32
    %184 = tpu.dynamic_rotate %140 by %c255_i32_66 dim 1 : vector<8x256xf32>, i32 -> vector<8x256xf32>
    %c15_i32_67 = arith.constant 15 : i32
    %185 = vector.broadcast %c15_i32_67 : i32 to vector<8x256xi32>
    %186 = arith.cmpi slt, %4, %185 : vector<8x256xi32>
    %cst_68 = arith.constant 0.000000e+00 : f32
    %187 = vector.broadcast %cst_68 : f32 to vector<8x256xf32>
    %188 = arith.select %186, %184, %187 : vector<8x256xi1>, vector<8x256xf32>
    %c0_69 = arith.constant 0 : index
    %c6_70 = arith.constant 6 : index
    %189 = vector.load %arg7[%c0_69, %c6_70] : memref<8x11xf32, #tpu.memory_space<vmem>>, vector<8x1xf32>
    %190 = vector.broadcast %189 : vector<8x1xf32> to vector<8x256xf32>
    %191 = arith.mulf %188, %190 : vector<8x256xf32>
    %c254_i32_71 = arith.constant 254 : i32
    %192 = tpu.dynamic_rotate %140 by %c254_i32_71 dim 1 : vector<8x256xf32>, i32 -> vector<8x256xf32>
    %c14_i32_72 = arith.constant 14 : i32
    %193 = vector.broadcast %c14_i32_72 : i32 to vector<8x256xi32>
    %194 = arith.cmpi slt, %4, %193 : vector<8x256xi32>
    %cst_73 = arith.constant 0.000000e+00 : f32
    %195 = vector.broadcast %cst_73 : f32 to vector<8x256xf32>
    %196 = arith.select %194, %192, %195 : vector<8x256xi1>, vector<8x256xf32>
    %c0_74 = arith.constant 0 : index
    %c7_75 = arith.constant 7 : index
    %197 = vector.load %arg7[%c0_74, %c7_75] : memref<8x11xf32, #tpu.memory_space<vmem>>, vector<8x1xf32>
    %198 = vector.broadcast %197 : vector<8x1xf32> to vector<8x256xf32>
    %199 = arith.mulf %196, %198 : vector<8x256xf32>
    %c253_i32_76 = arith.constant 253 : i32
    %200 = tpu.dynamic_rotate %140 by %c253_i32_76 dim 1 : vector<8x256xf32>, i32 -> vector<8x256xf32>
    %c13_i32_77 = arith.constant 13 : i32
    %201 = vector.broadcast %c13_i32_77 : i32 to vector<8x256xi32>
    %202 = arith.cmpi slt, %4, %201 : vector<8x256xi32>
    %cst_78 = arith.constant 0.000000e+00 : f32
    %203 = vector.broadcast %cst_78 : f32 to vector<8x256xf32>
    %204 = arith.select %202, %200, %203 : vector<8x256xi1>, vector<8x256xf32>
    %c0_79 = arith.constant 0 : index
    %c8 = arith.constant 8 : index
    %205 = vector.load %arg7[%c0_79, %c8] : memref<8x11xf32, #tpu.memory_space<vmem>>, vector<8x1xf32>
    %206 = vector.broadcast %205 : vector<8x1xf32> to vector<8x256xf32>
    %207 = arith.mulf %204, %206 : vector<8x256xf32>
    %c252_i32 = arith.constant 252 : i32
    %208 = tpu.dynamic_rotate %140 by %c252_i32 dim 1 : vector<8x256xf32>, i32 -> vector<8x256xf32>
    %c12_i32 = arith.constant 12 : i32
    %209 = vector.broadcast %c12_i32 : i32 to vector<8x256xi32>
    %210 = arith.cmpi slt, %4, %209 : vector<8x256xi32>
    %cst_80 = arith.constant 0.000000e+00 : f32
    %211 = vector.broadcast %cst_80 : f32 to vector<8x256xf32>
    %212 = arith.select %210, %208, %211 : vector<8x256xi1>, vector<8x256xf32>
    %c0_81 = arith.constant 0 : index
    %c9 = arith.constant 9 : index
    %213 = vector.load %arg7[%c0_81, %c9] : memref<8x11xf32, #tpu.memory_space<vmem>>, vector<8x1xf32>
    %214 = vector.broadcast %213 : vector<8x1xf32> to vector<8x256xf32>
    %215 = arith.mulf %212, %214 : vector<8x256xf32>
    %c251_i32 = arith.constant 251 : i32
    %216 = tpu.dynamic_rotate %140 by %c251_i32 dim 1 : vector<8x256xf32>, i32 -> vector<8x256xf32>
    %c11_i32 = arith.constant 11 : i32
    %217 = vector.broadcast %c11_i32 : i32 to vector<8x256xi32>
    %218 = arith.cmpi slt, %4, %217 : vector<8x256xi32>
    %cst_82 = arith.constant 0.000000e+00 : f32
    %219 = vector.broadcast %cst_82 : f32 to vector<8x256xf32>
    %220 = arith.select %218, %216, %219 : vector<8x256xi1>, vector<8x256xf32>
    %c0_83 = arith.constant 0 : index
    %c10 = arith.constant 10 : index
    %221 = vector.load %arg7[%c0_83, %c10] : memref<8x11xf32, #tpu.memory_space<vmem>>, vector<8x1xf32>
    %222 = vector.broadcast %221 : vector<8x1xf32> to vector<8x256xf32>
    %223 = arith.mulf %220, %222 : vector<8x256xf32>
    %224 = arith.addf %148, %156 : vector<8x256xf32>
    %225 = arith.addf %164, %172 : vector<8x256xf32>
    %226 = arith.addf %180, %183 : vector<8x256xf32>
    %227 = arith.addf %191, %199 : vector<8x256xf32>
    %228 = arith.addf %207, %215 : vector<8x256xf32>
    %229 = arith.addf %224, %225 : vector<8x256xf32>
    %230 = arith.addf %226, %227 : vector<8x256xf32>
    %231 = arith.addf %228, %223 : vector<8x256xf32>
    %232 = arith.addf %229, %230 : vector<8x256xf32>
    %233 = arith.addf %232, %231 : vector<8x256xf32>
    %c0_84 = arith.constant 0 : index
    %c0_85 = arith.constant 0 : index
    %234 = vector.load %arg8[%c0_84, %c0_85] : memref<8x1xf32, #tpu.memory_space<vmem>>, vector<8x1xf32>
    %235 = vector.broadcast %234 : vector<8x1xf32> to vector<8x256xf32>
    %236 = arith.addf %233, %235 : vector<8x256xf32>
    %c80_i32 = arith.constant 80 : i32
    %237 = tpu.dynamic_rotate %236 by %c80_i32 dim 1 : vector<8x256xf32>, i32 -> vector<8x256xf32>
    %c5_i32_86 = arith.constant 5 : i32
    %238 = vector.broadcast %c5_i32_86 : i32 to vector<8x256xi32>
    %239 = arith.cmpi sge, %7, %238 : vector<8x256xi32>
    %cst_87 = arith.constant 0.000000e+00 : f32
    %240 = vector.broadcast %cst_87 : f32 to vector<8x256xf32>
    %241 = arith.select %239, %237, %240 : vector<8x256xi1>, vector<8x256xf32>
    %c0_88 = arith.constant 0 : index
    %c0_89 = arith.constant 0 : index
    %242 = vector.load %arg9[%c0_88, %c0_89] : memref<8x11xf32, #tpu.memory_space<vmem>>, vector<8x1xf32>
    %243 = vector.broadcast %242 : vector<8x1xf32> to vector<8x256xf32>
    %244 = arith.mulf %241, %243 : vector<8x256xf32>
    %c64_i32 = arith.constant 64 : i32
    %245 = tpu.dynamic_rotate %236 by %c64_i32 dim 1 : vector<8x256xf32>, i32 -> vector<8x256xf32>
    %c4_i32_90 = arith.constant 4 : i32
    %246 = vector.broadcast %c4_i32_90 : i32 to vector<8x256xi32>
    %247 = arith.cmpi sge, %7, %246 : vector<8x256xi32>
    %cst_91 = arith.constant 0.000000e+00 : f32
    %248 = vector.broadcast %cst_91 : f32 to vector<8x256xf32>
    %249 = arith.select %247, %245, %248 : vector<8x256xi1>, vector<8x256xf32>
    %c0_92 = arith.constant 0 : index
    %c1_93 = arith.constant 1 : index
    %250 = vector.load %arg9[%c0_92, %c1_93] : memref<8x11xf32, #tpu.memory_space<vmem>>, vector<8x1xf32>
    %251 = vector.broadcast %250 : vector<8x1xf32> to vector<8x256xf32>
    %252 = arith.mulf %249, %251 : vector<8x256xf32>
    %c48_i32_94 = arith.constant 48 : i32
    %253 = tpu.dynamic_rotate %236 by %c48_i32_94 dim 1 : vector<8x256xf32>, i32 -> vector<8x256xf32>
    %c3_i32_95 = arith.constant 3 : i32
    %254 = vector.broadcast %c3_i32_95 : i32 to vector<8x256xi32>
    %255 = arith.cmpi sge, %7, %254 : vector<8x256xi32>
    %cst_96 = arith.constant 0.000000e+00 : f32
    %256 = vector.broadcast %cst_96 : f32 to vector<8x256xf32>
    %257 = arith.select %255, %253, %256 : vector<8x256xi1>, vector<8x256xf32>
    %c0_97 = arith.constant 0 : index
    %c2_98 = arith.constant 2 : index
    %258 = vector.load %arg9[%c0_97, %c2_98] : memref<8x11xf32, #tpu.memory_space<vmem>>, vector<8x1xf32>
    %259 = vector.broadcast %258 : vector<8x1xf32> to vector<8x256xf32>
    %260 = arith.mulf %257, %259 : vector<8x256xf32>
    %c32_i32_99 = arith.constant 32 : i32
    %261 = tpu.dynamic_rotate %236 by %c32_i32_99 dim 1 : vector<8x256xf32>, i32 -> vector<8x256xf32>
    %c2_i32_100 = arith.constant 2 : i32
    %262 = vector.broadcast %c2_i32_100 : i32 to vector<8x256xi32>
    %263 = arith.cmpi sge, %7, %262 : vector<8x256xi32>
    %cst_101 = arith.constant 0.000000e+00 : f32
    %264 = vector.broadcast %cst_101 : f32 to vector<8x256xf32>
    %265 = arith.select %263, %261, %264 : vector<8x256xi1>, vector<8x256xf32>
    %c0_102 = arith.constant 0 : index
    %c3_103 = arith.constant 3 : index
    %266 = vector.load %arg9[%c0_102, %c3_103] : memref<8x11xf32, #tpu.memory_space<vmem>>, vector<8x1xf32>
    %267 = vector.broadcast %266 : vector<8x1xf32> to vector<8x256xf32>
    %268 = arith.mulf %265, %267 : vector<8x256xf32>
    %c16_i32_104 = arith.constant 16 : i32
    %269 = tpu.dynamic_rotate %236 by %c16_i32_104 dim 1 : vector<8x256xf32>, i32 -> vector<8x256xf32>
    %c1_i32_105 = arith.constant 1 : i32
    %270 = vector.broadcast %c1_i32_105 : i32 to vector<8x256xi32>
    %271 = arith.cmpi sge, %7, %270 : vector<8x256xi32>
    %cst_106 = arith.constant 0.000000e+00 : f32
    %272 = vector.broadcast %cst_106 : f32 to vector<8x256xf32>
    %273 = arith.select %271, %269, %272 : vector<8x256xi1>, vector<8x256xf32>
    %c0_107 = arith.constant 0 : index
    %c4_108 = arith.constant 4 : index
    %274 = vector.load %arg9[%c0_107, %c4_108] : memref<8x11xf32, #tpu.memory_space<vmem>>, vector<8x1xf32>
    %275 = vector.broadcast %274 : vector<8x1xf32> to vector<8x256xf32>
    %276 = arith.mulf %273, %275 : vector<8x256xf32>
    %c0_109 = arith.constant 0 : index
    %c5_110 = arith.constant 5 : index
    %277 = vector.load %arg9[%c0_109, %c5_110] : memref<8x11xf32, #tpu.memory_space<vmem>>, vector<8x1xf32>
    %278 = vector.broadcast %277 : vector<8x1xf32> to vector<8x256xf32>
    %279 = arith.mulf %236, %278 : vector<8x256xf32>
    %c240_i32_111 = arith.constant 240 : i32
    %280 = tpu.dynamic_rotate %236 by %c240_i32_111 dim 1 : vector<8x256xf32>, i32 -> vector<8x256xf32>
    %c15_i32_112 = arith.constant 15 : i32
    %281 = vector.broadcast %c15_i32_112 : i32 to vector<8x256xi32>
    %282 = arith.cmpi slt, %7, %281 : vector<8x256xi32>
    %cst_113 = arith.constant 0.000000e+00 : f32
    %283 = vector.broadcast %cst_113 : f32 to vector<8x256xf32>
    %284 = arith.select %282, %280, %283 : vector<8x256xi1>, vector<8x256xf32>
    %c0_114 = arith.constant 0 : index
    %c6_115 = arith.constant 6 : index
    %285 = vector.load %arg9[%c0_114, %c6_115] : memref<8x11xf32, #tpu.memory_space<vmem>>, vector<8x1xf32>
    %286 = vector.broadcast %285 : vector<8x1xf32> to vector<8x256xf32>
    %287 = arith.mulf %284, %286 : vector<8x256xf32>
    %c224_i32_116 = arith.constant 224 : i32
    %288 = tpu.dynamic_rotate %236 by %c224_i32_116 dim 1 : vector<8x256xf32>, i32 -> vector<8x256xf32>
    %c14_i32_117 = arith.constant 14 : i32
    %289 = vector.broadcast %c14_i32_117 : i32 to vector<8x256xi32>
    %290 = arith.cmpi slt, %7, %289 : vector<8x256xi32>
    %cst_118 = arith.constant 0.000000e+00 : f32
    %291 = vector.broadcast %cst_118 : f32 to vector<8x256xf32>
    %292 = arith.select %290, %288, %291 : vector<8x256xi1>, vector<8x256xf32>
    %c0_119 = arith.constant 0 : index
    %c7_120 = arith.constant 7 : index
    %293 = vector.load %arg9[%c0_119, %c7_120] : memref<8x11xf32, #tpu.memory_space<vmem>>, vector<8x1xf32>
    %294 = vector.broadcast %293 : vector<8x1xf32> to vector<8x256xf32>
    %295 = arith.mulf %292, %294 : vector<8x256xf32>
    %c208_i32_121 = arith.constant 208 : i32
    %296 = tpu.dynamic_rotate %236 by %c208_i32_121 dim 1 : vector<8x256xf32>, i32 -> vector<8x256xf32>
    %c13_i32_122 = arith.constant 13 : i32
    %297 = vector.broadcast %c13_i32_122 : i32 to vector<8x256xi32>
    %298 = arith.cmpi slt, %7, %297 : vector<8x256xi32>
    %cst_123 = arith.constant 0.000000e+00 : f32
    %299 = vector.broadcast %cst_123 : f32 to vector<8x256xf32>
    %300 = arith.select %298, %296, %299 : vector<8x256xi1>, vector<8x256xf32>
    %c0_124 = arith.constant 0 : index
    %c8_125 = arith.constant 8 : index
    %301 = vector.load %arg9[%c0_124, %c8_125] : memref<8x11xf32, #tpu.memory_space<vmem>>, vector<8x1xf32>
    %302 = vector.broadcast %301 : vector<8x1xf32> to vector<8x256xf32>
    %303 = arith.mulf %300, %302 : vector<8x256xf32>
    %c192_i32 = arith.constant 192 : i32
    %304 = tpu.dynamic_rotate %236 by %c192_i32 dim 1 : vector<8x256xf32>, i32 -> vector<8x256xf32>
    %c12_i32_126 = arith.constant 12 : i32
    %305 = vector.broadcast %c12_i32_126 : i32 to vector<8x256xi32>
    %306 = arith.cmpi slt, %7, %305 : vector<8x256xi32>
    %cst_127 = arith.constant 0.000000e+00 : f32
    %307 = vector.broadcast %cst_127 : f32 to vector<8x256xf32>
    %308 = arith.select %306, %304, %307 : vector<8x256xi1>, vector<8x256xf32>
    %c0_128 = arith.constant 0 : index
    %c9_129 = arith.constant 9 : index
    %309 = vector.load %arg9[%c0_128, %c9_129] : memref<8x11xf32, #tpu.memory_space<vmem>>, vector<8x1xf32>
    %310 = vector.broadcast %309 : vector<8x1xf32> to vector<8x256xf32>
    %311 = arith.mulf %308, %310 : vector<8x256xf32>
    %c176_i32 = arith.constant 176 : i32
    %312 = tpu.dynamic_rotate %236 by %c176_i32 dim 1 : vector<8x256xf32>, i32 -> vector<8x256xf32>
    %c11_i32_130 = arith.constant 11 : i32
    %313 = vector.broadcast %c11_i32_130 : i32 to vector<8x256xi32>
    %314 = arith.cmpi slt, %7, %313 : vector<8x256xi32>
    %cst_131 = arith.constant 0.000000e+00 : f32
    %315 = vector.broadcast %cst_131 : f32 to vector<8x256xf32>
    %316 = arith.select %314, %312, %315 : vector<8x256xi1>, vector<8x256xf32>
    %c0_132 = arith.constant 0 : index
    %c10_133 = arith.constant 10 : index
    %317 = vector.load %arg9[%c0_132, %c10_133] : memref<8x11xf32, #tpu.memory_space<vmem>>, vector<8x1xf32>
    %318 = vector.broadcast %317 : vector<8x1xf32> to vector<8x256xf32>
    %319 = arith.mulf %316, %318 : vector<8x256xf32>
    %320 = arith.addf %244, %252 : vector<8x256xf32>
    %321 = arith.addf %260, %268 : vector<8x256xf32>
    %322 = arith.addf %276, %279 : vector<8x256xf32>
    %323 = arith.addf %287, %295 : vector<8x256xf32>
    %324 = arith.addf %303, %311 : vector<8x256xf32>
    %325 = arith.addf %320, %321 : vector<8x256xf32>
    %326 = arith.addf %322, %323 : vector<8x256xf32>
    %327 = arith.addf %324, %319 : vector<8x256xf32>
    %328 = arith.addf %325, %326 : vector<8x256xf32>
    %329 = arith.addf %328, %327 : vector<8x256xf32>
    %c0_134 = arith.constant 0 : index
    %c0_135 = arith.constant 0 : index
    %330 = vector.load %arg10[%c0_134, %c0_135] : memref<8x1xf32, #tpu.memory_space<vmem>>, vector<8x1xf32>
    %331 = vector.broadcast %330 : vector<8x1xf32> to vector<8x256xf32>
    %332 = arith.addf %329, %331 : vector<8x256xf32>
    %c0_136 = arith.constant 0 : index
    %c0_137 = arith.constant 0 : index
    %333 = vector.load %arg11[%c0_136, %c0_137] : memref<8x8xf32, #tpu.memory_space<vmem>>, vector<8x1xf32>
    %334 = vector.extract_strided_slice %332 {offsets = [0, 0], sizes = [1, 256], strides = [1, 1]} : vector<8x256xf32> to vector<1x256xf32>
    %335 = vector.broadcast %333 : vector<8x1xf32> to vector<8x256xf32>
    %336 = vector.broadcast %334 : vector<1x256xf32> to vector<8x256xf32>
    %337 = arith.mulf %335, %336 : vector<8x256xf32>
    %c0_138 = arith.constant 0 : index
    %c1_139 = arith.constant 1 : index
    %338 = vector.load %arg11[%c0_138, %c1_139] : memref<8x8xf32, #tpu.memory_space<vmem>>, vector<8x1xf32>
    %339 = vector.extract_strided_slice %332 {offsets = [1, 0], sizes = [1, 256], strides = [1, 1]} : vector<8x256xf32> to vector<1x256xf32>
    %340 = vector.broadcast %338 : vector<8x1xf32> to vector<8x256xf32>
    %341 = vector.broadcast %339 : vector<1x256xf32> to vector<8x256xf32>
    %342 = arith.mulf %340, %341 : vector<8x256xf32>
    %343 = arith.addf %337, %342 : vector<8x256xf32>
    %c0_140 = arith.constant 0 : index
    %c2_141 = arith.constant 2 : index
    %344 = vector.load %arg11[%c0_140, %c2_141] : memref<8x8xf32, #tpu.memory_space<vmem>>, vector<8x1xf32>
    %345 = vector.extract_strided_slice %332 {offsets = [2, 0], sizes = [1, 256], strides = [1, 1]} : vector<8x256xf32> to vector<1x256xf32>
    %346 = vector.broadcast %344 : vector<8x1xf32> to vector<8x256xf32>
    %347 = vector.broadcast %345 : vector<1x256xf32> to vector<8x256xf32>
    %348 = arith.mulf %346, %347 : vector<8x256xf32>
    %349 = arith.addf %343, %348 : vector<8x256xf32>
    %c0_142 = arith.constant 0 : index
    %c3_143 = arith.constant 3 : index
    %350 = vector.load %arg11[%c0_142, %c3_143] : memref<8x8xf32, #tpu.memory_space<vmem>>, vector<8x1xf32>
    %351 = vector.extract_strided_slice %332 {offsets = [3, 0], sizes = [1, 256], strides = [1, 1]} : vector<8x256xf32> to vector<1x256xf32>
    %352 = vector.broadcast %350 : vector<8x1xf32> to vector<8x256xf32>
    %353 = vector.broadcast %351 : vector<1x256xf32> to vector<8x256xf32>
    %354 = arith.mulf %352, %353 : vector<8x256xf32>
    %355 = arith.addf %349, %354 : vector<8x256xf32>
    %c0_144 = arith.constant 0 : index
    %c4_145 = arith.constant 4 : index
    %356 = vector.load %arg11[%c0_144, %c4_145] : memref<8x8xf32, #tpu.memory_space<vmem>>, vector<8x1xf32>
    %357 = vector.extract_strided_slice %332 {offsets = [4, 0], sizes = [1, 256], strides = [1, 1]} : vector<8x256xf32> to vector<1x256xf32>
    %358 = vector.broadcast %356 : vector<8x1xf32> to vector<8x256xf32>
    %359 = vector.broadcast %357 : vector<1x256xf32> to vector<8x256xf32>
    %360 = arith.mulf %358, %359 : vector<8x256xf32>
    %361 = arith.addf %355, %360 : vector<8x256xf32>
    %c0_146 = arith.constant 0 : index
    %c5_147 = arith.constant 5 : index
    %362 = vector.load %arg11[%c0_146, %c5_147] : memref<8x8xf32, #tpu.memory_space<vmem>>, vector<8x1xf32>
    %363 = vector.extract_strided_slice %332 {offsets = [5, 0], sizes = [1, 256], strides = [1, 1]} : vector<8x256xf32> to vector<1x256xf32>
    %364 = vector.broadcast %362 : vector<8x1xf32> to vector<8x256xf32>
    %365 = vector.broadcast %363 : vector<1x256xf32> to vector<8x256xf32>
    %366 = arith.mulf %364, %365 : vector<8x256xf32>
    %367 = arith.addf %361, %366 : vector<8x256xf32>
    %c0_148 = arith.constant 0 : index
    %c6_149 = arith.constant 6 : index
    %368 = vector.load %arg11[%c0_148, %c6_149] : memref<8x8xf32, #tpu.memory_space<vmem>>, vector<8x1xf32>
    %369 = vector.extract_strided_slice %332 {offsets = [6, 0], sizes = [1, 256], strides = [1, 1]} : vector<8x256xf32> to vector<1x256xf32>
    %370 = vector.broadcast %368 : vector<8x1xf32> to vector<8x256xf32>
    %371 = vector.broadcast %369 : vector<1x256xf32> to vector<8x256xf32>
    %372 = arith.mulf %370, %371 : vector<8x256xf32>
    %373 = arith.addf %367, %372 : vector<8x256xf32>
    %c0_150 = arith.constant 0 : index
    %c7_151 = arith.constant 7 : index
    %374 = vector.load %arg11[%c0_150, %c7_151] : memref<8x8xf32, #tpu.memory_space<vmem>>, vector<8x1xf32>
    %375 = vector.extract_strided_slice %332 {offsets = [7, 0], sizes = [1, 256], strides = [1, 1]} : vector<8x256xf32> to vector<1x256xf32>
    %376 = vector.broadcast %374 : vector<8x1xf32> to vector<8x256xf32>
    %377 = vector.broadcast %375 : vector<1x256xf32> to vector<8x256xf32>
    %378 = arith.mulf %376, %377 : vector<8x256xf32>
    %379 = arith.addf %373, %378 : vector<8x256xf32>
    %c0_152 = arith.constant 0 : index
    %c0_153 = arith.constant 0 : index
    %380 = vector.load %arg12[%c0_152, %c0_153] : memref<8x1xf32, #tpu.memory_space<vmem>>, vector<8x1xf32>
    %381 = vector.broadcast %380 : vector<8x1xf32> to vector<8x256xf32>
    %382 = arith.mulf %379, %381 : vector<8x256xf32>
    %c0_154 = arith.constant 0 : index
    %c0_155 = arith.constant 0 : index
    %383 = vector.load %arg13[%c0_154, %c0_155] : memref<8x1xf32, #tpu.memory_space<vmem>>, vector<8x1xf32>
    %384 = vector.broadcast %383 : vector<8x1xf32> to vector<8x256xf32>
    %385 = arith.addf %382, %384 : vector<8x256xf32>
    %386 = arith.negf %385 : vector<8x256xf32>
    %387 = math.exp %386 : vector<8x256xf32>
    %cst_156 = arith.constant 1.000000e+00 : f32
    %388 = vector.broadcast %cst_156 : f32 to vector<8x256xf32>
    %389 = arith.addf %388, %387 : vector<8x256xf32>
    %390 = arith.divf %388, %389 : vector<8x256xf32>
    %391 = arith.mulf %385, %390 : vector<8x256xf32>
    %392 = arith.negf %391 : vector<8x256xf32>
    %393 = math.exp %392 : vector<8x256xf32>
    %cst_157 = arith.constant 1.000000e+00 : f32
    %394 = vector.broadcast %cst_157 : f32 to vector<8x256xf32>
    %395 = arith.addf %394, %393 : vector<8x256xf32>
    %396 = arith.divf %394, %395 : vector<8x256xf32>
    %c0_158 = arith.constant 0 : index
    %c0_159 = arith.constant 0 : index
    %c0_160 = arith.constant 0 : index
    %397 = vector.load %arg14[%c0_158, %c0_159, %c0_160] : memref<1x8x256xf32, #tpu.memory_space<vmem>>, vector<1x8x256xf32>
    %398 = vector.shape_cast %397 : vector<1x8x256xf32> to vector<8x256xf32>
    %399 = vector.shape_cast %396 : vector<8x256xf32> to vector<1x8x256xf32>
    tpu.vector_store %arg14[%c0_158, %c0_159, %c0_160], %399 {strides = array<i32>} : memref<1x8x256xf32, #tpu.memory_space<vmem>>, vector<1x8x256xf32>,
    return
  }
  func.func @transform_0(%arg0: i32) -> (i32, i32, i32) {
    %c0_i32 = arith.constant 0 : i32
    %c0_i32_0 = arith.constant 0 : i32
    %c0_i32_1 = arith.constant 0 : i32
    return %arg0, %c0_i32, %c0_i32_0 : i32, i32, i32
  }
  func.func @transform_1(%arg0: i32) -> (i32, i32) {
    %c0_i32 = arith.constant 0 : i32
    %c0_i32_0 = arith.constant 0 : i32
    %c0_i32_1 = arith.constant 0 : i32
    return %c0_i32, %c0_i32_0 : i32, i32
  }
  func.func @transform_2(%arg0: i32) -> (i32, i32) {
    %c0_i32 = arith.constant 0 : i32
    %c0_i32_0 = arith.constant 0 : i32
    %c0_i32_1 = arith.constant 0 : i32
    return %c0_i32, %c0_i32_0 : i32, i32
  }
  func.func @transform_3(%arg0: i32) -> (i32, i32) {
    %c0_i32 = arith.constant 0 : i32
    %c0_i32_0 = arith.constant 0 : i32
    %c0_i32_1 = arith.constant 0 : i32
    return %c0_i32, %c0_i32_0 : i32, i32
  }
  func.func @transform_4(%arg0: i32) -> (i32, i32) {
    %c0_i32 = arith.constant 0 : i32
    %c0_i32_0 = arith.constant 0 : i32
    %c0_i32_1 = arith.constant 0 : i32
    return %c0_i32, %c0_i32_0 : i32, i32
  }
  func.func @transform_5(%arg0: i32) -> (i32, i32) {
    %c0_i32 = arith.constant 0 : i32
    %c0_i32_0 = arith.constant 0 : i32
    %c0_i32_1 = arith.constant 0 : i32
    return %c0_i32, %c0_i32_0 : i32, i32
  }
  func.func @transform_6(%arg0: i32) -> (i32, i32) {
    %c0_i32 = arith.constant 0 : i32
    %c0_i32_0 = arith.constant 0 : i32
    %c0_i32_1 = arith.constant 0 : i32
    return %c0_i32, %c0_i32_0 : i32, i32
  }
  func.func @transform_7(%arg0: i32) -> (i32, i32) {
    %c0_i32 = arith.constant 0 : i32
    %c0_i32_0 = arith.constant 0 : i32
    %c0_i32_1 = arith.constant 0 : i32
    return %c0_i32, %c0_i32_0 : i32, i32
  }
  func.func @transform_8(%arg0: i32) -> (i32, i32) {
    %c0_i32 = arith.constant 0 : i32
    %c0_i32_0 = arith.constant 0 : i32
    %c0_i32_1 = arith.constant 0 : i32
    return %c0_i32, %c0_i32_0 : i32, i32
  }
  func.func @transform_9(%arg0: i32) -> (i32, i32) {
    %c0_i32 = arith.constant 0 : i32
    %c0_i32_0 = arith.constant 0 : i32
    %c0_i32_1 = arith.constant 0 : i32
    return %c0_i32, %c0_i32_0 : i32, i32
  }
  func.func @transform_10(%arg0: i32) -> (i32, i32) {
    %c0_i32 = arith.constant 0 : i32
    %c0_i32_0 = arith.constant 0 : i32
    %c0_i32_1 = arith.constant 0 : i32
    return %c0_i32, %c0_i32_0 : i32, i32
  }
  func.func @transform_11(%arg0: i32) -> (i32, i32) {
    %c0_i32 = arith.constant 0 : i32
    %c0_i32_0 = arith.constant 0 : i32
    %c0_i32_1 = arith.constant 0 : i32
    return %c0_i32, %c0_i32_0 : i32, i32
  }
  func.func @transform_12(%arg0: i32) -> (i32, i32) {
    %c0_i32 = arith.constant 0 : i32
    %c0_i32_0 = arith.constant 0 : i32
    %c0_i32_1 = arith.constant 0 : i32
    return %c0_i32, %c0_i32_0 : i32, i32
  }
  func.func @transform_13(%arg0: i32) -> (i32, i32, i32) {
    %c0_i32 = arith.constant 0 : i32
    %c0_i32_0 = arith.constant 0 : i32
    %c0_i32_1 = arith.constant 0 : i32
    return %arg0, %c0_i32, %c0_i32_0 : i32, i32, i32
  }
}

</mosaic_0001>

<bundles_post_ra>
// kernel: tpu_custom_call.1
= control target key start
LH: loop header
LB: loop body
LE: loop exit
PB: predicated region body
PF: predicated region fallthrough
CT: control target
= control target key end

     0   :  { %18 = vsyncpa [#allocation3], 0  ;;  %s2614_s0 = inlined_call_operand.vmem [shape: f32[2,8,256], index: 0, kind: input, shape index: {}]   ;;  %s2615_s1 = inlined_call_operand.hbm [shape: s32[1,256], index: 1, kind: input, shape index: {}]   ;;  %s2616_s2 = inlined_call_operand.hbm [shape: s32[1,256], index: 2, kind: input, shape index: {}]   ;;  %s2617_s3 = inlined_call_operand.vmem [shape: f32[8,8], index: 3, kind: input, shape index: {}]   ;;  %s2618_s4 = inlined_call_operand.vmem [shape: f32[8,1], index: 4, kind: input, shape index: {}]   ;;  %s2619_s5 = inlined_call_operand.vmem [shape: f32[8,1], index: 5, kind: input, shape index: {}]   ;;  %s2620_s6 = inlined_call_operand.vmem [shape: f32[8,11], index: 6, kind: input, shape index: {}]   ;;  %s2621_s7 = inlined_call_operand.vmem [shape: f32[8,1], index: 7, kind: input, shape index: {}]   ;;  %s2622_s8 = inlined_call_operand.vmem [shape: f32[8,11], index: 8, kind: input, shape index: {}]   ;;  %s2623_s9 = inlined_call_operand.vmem [shape: f32[8,1], index: 9, kind: input, shape index: {}]   ;;  %s2624_s10 = inlined_call_operand.vmem [shape: f32[8,8], index: 10, kind: input, shape index: {}]   ;;  %s2625_s11 = inlined_call_operand.vmem [shape: f32[8,1], index: 11, kind: input, shape index: {}]   ;;  %s2626_s12 = inlined_call_operand.vmem [shape: f32[8,1], index: 12, kind: input, shape index: {}]   ;;  %s2627_s13 = inlined_call_operand.hbm [shape: f32[2,8,256], index: 13, kind: output, shape index: {}]  }
   0x1   :  { %19 = vsyncpa [#allocation6], 0 }
   0x2   :  { %20 = vsyncpa [#allocation4], 0 }
   0x3   :  { %22 = vsyncpa [#allocation4 + $0x1], 0  ;;  %s1834_s25 = smov 0   ;;  %s1836_s26 = smov 0  }
   0x4   :  { %s1838_s27 = smov 0   ;;  %s1840_s28 = smov 0  }
   0x5 LB: > { %2668 = sst [smem:[#allocation11_spill]] %s1719_s25  ;;  %s1855_s29 = sadd.s32 4294967295, %s1731_s28   ;;  %s1731_s28 = sphi %s1840_s28, %s2723_s28   ;;  %s1727_s27 = sphi %s1838_s27, %s2725_s27   ;;  %s1723_s26 = sphi %s1836_s26, %s2727_s26   ;;  %s1719_s25 = sphi %s1834_s25, %s2726_s25  }
   0x6   : > { %2669 = sst [smem:[#allocation12_spill]] %s1727_s27  ;;  %s1426_s30 = sadd.s32 4294967294, %s1731_s28  }
   0x7   : > { %s1859_s14 = sadd.s32 1, %s1731_s28   ;;  %s313_s15 = sadd.s32 1, %s1727_s27 }
   0x8   : > { %2670 = sst [smem:[#allocation13_spill]] %s1859_s14  ;;  %s310_s16 = ssub.s32 %s1731_s28, %s1859_s14 }
   0x9   : > { %p323_p0 = scmp.ne.s32.totalorder %s1727_s27, %s1723_s26  ;;  %p311_p1 = scmp.eq.s32.totalorder %s310_s16, 0 }
   0xa   : > { %p324_p2 = scmp.eq.s32.totalorder %s1855_s29, 1  ;;  %p329_p3 = scmp.ne.s32.totalorder %s1723_s26, %s1719_s25 }
   0xb   : > { %p330_p4 = scmp.eq.s32.totalorder %s1426_s30, 1  ;;  %p1427_p7 = scmp.ge.s32.totalorder %s1731_s28, 1 }
   0xc   : > { %s1870_s17 = scalar_select %p311_p1, %s1727_s27, %s313_s15  }
   0xd   : > { %p1872_p5 = por %p324_p2, %p323_p0  ;;  %p1876_p6 = por %p330_p4, %p329_p3 }
   0xe   : > { %2671 = sst [smem:[#allocation14_spill]] %s1870_s17  ;;  %p337_p8 = scmp.lt.s32.totalorder %s1731_s28, 3 }
   0xf   : > { %s2672_s18 = scalar_select %p1872_p5, 1, 0 }
  0x10   : > { %s2673_s19 = scalar_select %p1876_p6, 1, 0 }
  0x11   : > { %p2632_p9 = scmp.eq.s32.totalorder %s1855_s29, 0  ;;  %p1883_p10 = pnand %p1427_p7, %p337_p8 }
  0x12   : > { %2674 = sst [smem:[#allocation15_spill]] %s2673_s19  ;;  %s1733_s21 = smov [#allocation2]  }
  0x13   : > { %s2675_s20 = scalar_select %p1883_p10, 1, 0 }
  0x14   : > { %s350_s22 = sshll.u32 %s1733_s21, 4  ;;  %p1460_p11 = pneg %p1883_p10  ;;  %s351_s22 = int_to_ptr.vmem [resolvable:$true] %s350_s22 }
  0x15   : > { %s1734_s23 = smov [#allocation5]   ;;  %s1605_s17 = scalar_lea.hbm %s2615_s1, 32 }
  0x16   : > { %s361_s24 = sshll.u32 %s1734_s23, 4  ;;  %p1891_p12 = pnand %p2632_p9, %p1460_p11  ;;  %s1895_s24 = int_to_ptr.vmem [resolvable:$true] %s361_s24 }
  0x17   : > { %p1606_p13 = scmp.ne.s32.totalorder %s2615_s1, %s1605_s17  ;;  %p1612_p3 = scmp.lt.u32.totalorder %s1605_s17, %s2615_s1 }
  0x18   : > { %p1607_p0 = pneg %p1891_p12 }
  0x1a   : > { %p1608_p1 = pnand %p1607_p0, %p1606_p13 }
  0x1c   : > { %p1609_p2 = pneg %p1608_p1 }
  0x1e   : > { %p1614_p4 = pnand %p1612_p3, %p1609_p2 }
  0x20   : > { %1617 = shalt.err (!%p1614_p4)
}
  0x21   : > { %s1618_s19 = scalar_lea.vmem %s351_s22, 32  ;;  %p1626_p9 = scmp.lt.s32.totalorder %s351_s22, %s351_s22 }
  0x22   : > { %p1619_p7 = scmp.ne.s32.totalorder %s351_s22, %s1618_s19  ;;  %p1627_p6 = scmp.lt.s32.totalorder %s1618_s19, %s1618_s19 }
  0x24   : > { %p1621_p8 = pnand %p1619_p7, %p1607_p0  ;;  %p1628_p5 = por %p1627_p6, %p1626_p9 }
  0x26   : > { %p1622_p11 = pneg %p1621_p8 }
  0x28   : > { %p1629_p10 = pnand %p1628_p5, %p1622_p11 }
  0x2a   : > { %1632 = shalt.err (!%p1629_p10)
}
  0x2b   : > { %1463 = dma.hbm_to_vmem [thread:$0]  (!%p1891_p12), %s2615_s1, 32, %s351_s22, [#allocation3]  }
  0x2c   : > { %s1633_s16 = scalar_lea.hbm %s2616_s2, 32 }
  0x2d   : > { %p1634_p13 = scmp.ne.s32.totalorder %s2616_s2, %s1633_s16  ;;  %p1640_p9 = scmp.lt.u32.totalorder %s1633_s16, %s2616_s2 }
  0x2f   : > { %p1636_p6 = pnand %p1634_p13, %p1607_p0 }
  0x31   : > { %p1637_p5 = pneg %p1636_p6 }
  0x33   : > { %p1642_p10 = pnand %p1640_p9, %p1637_p5 }
  0x35   : > { %1645 = shalt.err (!%p1642_p10)
}
  0x36   : > { %s1646_s22 = scalar_lea.vmem %s1895_s24, 32  ;;  %p1654_p4 = scmp.lt.s32.totalorder %s1895_s24, %s1895_s24 }
  0x37   : > { %p1647_p1 = scmp.ne.s32.totalorder %s1895_s24, %s1646_s22  ;;  %p1655_p7 = scmp.lt.s32.totalorder %s1646_s22, %s1646_s22 }
  0x39   : > { %p1649_p2 = pnand %p1647_p1, %p1607_p0  ;;  %p1656_p8 = por %p1655_p7, %p1654_p4 }
  0x3b   : > { %p1650_p3 = pneg %p1649_p2 }
  0x3d   : > { %p1657_p11 = pnand %p1656_p8, %p1650_p3 }
  0x3f   : > { %1660 = shalt.err (!%p1657_p11)
}
  0x40   : > { %1466 = dma.hbm_to_vmem [thread:$0]  (!%p1891_p12), %s2616_s2, 32, %s1895_s24, [#allocation6]  }
  0x41   : > { %p2677_p13 = scmp.ne.s32.totalorder %s2675_s20, 0 }
  0x42   : > { %p2678_p6 = scmp.eq.s32.totalorder (!%p2677_p13), %s1855_s29, 0 }
  0x43   : > { %412 = sbr.rel (%p2677_p13) target bundleno = 865 (0x361), region = 72 }
  0x4a   : > { %1706 = dma.done.wait (%p2678_p6), [#allocation3], 32   ;;  %p2679_p0 = pmov %p2678_p6 }
  0x4c   : > { %1708 = vsyncadd (%p2679_p0), [#allocation3], 4294967264  ;;  %p2680_p5 = pmov %p2679_p0 }
  0x4d   : > { %p2681_p9 = pmov %p2679_p0 }
  0x4e   : > { %1710 = dma.done.wait (%p2680_p5), [#allocation6], 32  }
  0x4f   : > { %1712 = vsyncadd (%p2681_p9), [#allocation6], 4294967264  ;;  %p460_p10 = scmp.lt.s32.totalorder %s1855_s29, 1  ;;  %s1735_s17 = smov 32   ;;  %v1741_v2 = vmov 1   ;;  %v1742_v3 = vmov 0   ;;  %v468_v4 = vlaneseq }
  0x50   : > { %s1736_s16 = smov 48   ;;  %s2642_s21 = smov 16   ;;  %1539 = vset.pattern.permute.xlu1 %v1741_v2  ;;  %1538 = vset.pattern.permute.xlu0 %v1742_v3  ;;  %v476_v10 = vld [vmem:[#allocation5] sm:$0x3]  ;;  %v1749_v61 = vmov 2   ;;  %v1750_v62 = vmov 3  }
  0x51   : > { %s461_s30 = scalar_select %p460_p10, %s1855_s29, 1  ;;  %v1989_v5 = vshrl.u32 %v468_v4, 7  ;;  %v1997_v13 = vand.u32 127, %v468_v4  ;;  %v645_v60 = vld [vmem:[%s2617_s3] sm:$0xff]  ;;  %v1751_v63 = vmov 4   ;;  %v1753_v4 = vmov 5  }
  0x52   : > { %s2640_s23 = smov 112   ;;  %s2638_s19 = smov 96  }
  0x53   : > { %s1448_s24 = sshll.u32 %s461_s30, 4  ;;  %s1740_s22 = smov 80   ;;  %v1992_v8 = vsub.s32 0, %v1989_v5  ;;  %v1995_v9 = vsub.s32 1, %v1989_v5  ;;  %vm2658_vm0 = vcmp.lt.s32.totalorder %v1997_v13, 32  ;;  %vm2654_vm1 = vcmp.lt.s32.totalorder %v1997_v13, 48 }
  0x54   : > { %s464_s14 = scalar_lea.vmem %s2614_s0, %s1448_s24  ;;  %vm2655_vm2 = vcmp.lt.s32.totalorder %v1997_v13, 16  ;;  %vm2653_vm9 = vcmp.lt.s32.totalorder %v1997_v13, 112  ;;  %vm2646_vm12 = vcmp.lt.s32.totalorder %v1997_v13, 96  ;;  %vm2659_vm15 = vcmp.lt.s32.totalorder %v1997_v13, 80  ;;  %s1743_s25 = smov 3  }
  0x55   : > { %v1959_v0 = vld [vmem:[%s464_s14] sm:$0xff]  ;;  %v1965_v1 = vld [vmem:[%s464_s14 + $0x8] sm:$0xff]  ;;  %v2000_v14 = vrot.slane %v476_v10, %v1992_v8  ;;  %v2003_v15 = vrot.slane %v476_v10, %v1995_v9  ;;  %s1744_s27 = smov 2   ;;  %s1745_s30 = smov 1  }
  0x56   : > { %498 = vrot.lane.b32.xlu1 %v1959_v0, %s1735_s17  ;;  %485 = vrot.lane.b32.xlu0 %v1959_v0, %s1736_s16  ;;  %s1746_s24 = smov 127   ;;  %s1747_s15 = smov 126   ;;  %v773_v10 = vld [vmem:[%s2618_s4] sm:$0xff] }
  0x57   : > { %vm2652_vm3 = vcmp.ge.s32.totalorder %v2000_v14, 2  ;;  %vm2651_vm4 = vcmp.ge.s32.totalorder %v2003_v15, 2  ;;  %vm2637_vm5 = vcmp.ge.s32.totalorder %v2000_v14, 3  ;;  %vm2636_vm6 = vcmp.ge.s32.totalorder %v2003_v15, 3  ;;  %s2692_s14 = smov 16   ;;  %s457_s20 = sand.u32 1, %s1723_s26  }
  0x58   : > { %vm2650_vm7 = vcmp.ge.s32.totalorder %v2000_v14, 1  ;;  %vm2649_vm8 = vcmp.ge.s32.totalorder %v2003_v15, 1  ;;  %vm2648_vm10 = vcmp.lt.s32.totalorder %v2000_v14, 15  ;;  %vm2647_vm11 = vcmp.lt.s32.totalorder %v2003_v15, 15  ;;  %p2719_p1 = scmp.ne.s32.totalorder %s2672_s18, 0 }
  0x59   : > { %vm2645_vm13 = vcmp.lt.s32.totalorder %v2000_v14, 14  ;;  %vm2644_vm14 = vcmp.lt.s32.totalorder %v2003_v15, 14 }
  0x5a   : > { %500 = vrot.lane.b32.xlu1 %v1965_v1, %s1735_s17  ;;  %487 = vrot.lane.b32.xlu0 %v1965_v1, %s1736_s16 }
  0x5e   : > { %511 = vrot.lane.b32.xlu1 %v1965_v1, %s2642_s21  ;;  %509 = vrot.lane.b32.xlu0 %v1959_v0, %s2642_s21  ;;  %s1758_s21 = smov 5  }
  0x62   : > { %522 = vrot.lane.b32.xlu1 %v1965_v1, %s2640_s23  ;;  %520 = vrot.lane.b32.xlu0 %v1959_v0, %s2640_s23  ;;  %s1759_s23 = smov 4  }
  0x66   : > { %533 = vrot.lane.b32.xlu1 %v1965_v1, %s2638_s19  ;;  %531 = vrot.lane.b32.xlu0 %v1959_v0, %s2638_s19  ;;  %s1748_s19 = smov 125  }
  0x6a   : > { %544 = vrot.lane.b32.xlu1 %v1965_v1, %s1740_s22  ;;  %542 = vrot.lane.b32.xlu0 %v1959_v0, %s1740_s22 }
  0xc8   : > { %v499_v6 = vpop.permute.xlu1 %498  ;;  %v486_v7 = vpop.permute.xlu0 %485 }
  0xcc   : > { %v501_v11 = vpop.permute.xlu1 %500  ;;  %v488_v12 = vpop.permute.xlu0 %487 }
  0xcd   : > { %v503_v18 = vsel %vm2658_vm0, %v499_v6, %v501_v11  ;;  %v504_v19 = vsel %vm2658_vm0, %v501_v11, %v499_v6  ;;  %v492_v22 = vsel %vm2654_vm1, %v486_v7, %v488_v12  ;;  %v493_v23 = vsel %vm2654_vm1, %v488_v12, %v486_v7  ;;  %v814_v7 = vld [vmem:[%s2620_s6] sm:$0xff] }
  0xce   : > { %v507_v26 = vsel %vm2652_vm3, %v504_v19, 0.0  ;;  %v508_v27 = vsel %vm2651_vm4, %v503_v18, 0.0  ;;  %v496_v28 = vsel %vm2637_vm5, %v493_v23, 0.0  ;;  %v497_v29 = vsel %vm2636_vm6, %v492_v22, 0.0  ;;  %v467_v23 = vld [vmem:[#allocation2] sm:$0x3] }
  0xcf   : > { %vm2657_vm6 = vcmp.lt.s32.totalorder %v2000_v14, 13  ;;  %vm2656_vm5 = vcmp.lt.s32.totalorder %v2003_v15, 13  ;;  %v553_v42 = vadd.f32 %v507_v26, %v496_v28  ;;  %v554_v43 = vadd.f32 %v508_v27, %v497_v29 }
  0xd0   : > { %v512_v16 = vpop.permute.xlu1 %511  ;;  %v510_v17 = vpop.permute.xlu0 %509  ;;  %v1754_v6 = vmov 7   ;;  %v1755_v11 = vmov 8   ;;  %v1756_v12 = vmov 9   ;;  %v2134_v26 = vrot.slane %v467_v23, %v1992_v8 }
  0xd1   : > { %v514_v24 = vsel %vm2655_vm2, %v510_v17, %v512_v16  ;;  %v515_v25 = vsel %vm2655_vm2, %v512_v16, %v510_v17  ;;  %v1757_v16 = vmov 10   ;;  %v2137_v27 = vrot.slane %v467_v23, %v1995_v9 }
  0xd2   : > { %v518_v30 = vsel %vm2650_vm7, %v515_v25, 0.0  ;;  %v519_v31 = vsel %vm2649_vm8, %v514_v24, 0.0  ;;  %vm583_vm8 = vcmp.ge.s32.totalorder %v2134_v26, 2  ;;  %vm594_vm4 = vcmp.ge.s32.totalorder %v2134_v26, 1 }
  0xd3   : > { %v555_v40 = vadd.f32 %v518_v30, %v1959_v0  ;;  %v556_v41 = vadd.f32 %v519_v31, %v1965_v1  ;;  %v1752_v0 = vmov 6   ;;  %v781_v1 = vld [vmem:[%s2619_s5] sm:$0xff]  ;;  %vm584_vm7 = vcmp.ge.s32.totalorder %v2137_v27, 2 }
  0xd4   : > { %v523_v20 = vpop.permute.xlu1 %522  ;;  %v521_v21 = vpop.permute.xlu0 %520  ;;  %vm2661_vm3 = vcmp.ge.s32.totalorder %v2137_v27, 1  ;;  %vm602_vm1 = vcmp.lt.s32.totalorder %v1997_v13, 127  ;;  %vm605_vm2 = vcmp.lt.s32.totalorder %v2134_v26, 15  ;;  %vm2665_vm0 = vcmp.lt.s32.totalorder %v2137_v27, 14 }
  0xd5   : > { %v525_v34 = vsel %vm2653_vm9, %v521_v21, %v523_v20  ;;  %v526_v35 = vsel %vm2653_vm9, %v523_v20, %v521_v21  ;;  %v559_v54 = vadd.f32 %v555_v40, %v553_v42  ;;  %v560_v55 = vadd.f32 %v556_v41, %v554_v43 }
  0xd6   : > { %v529_v44 = vsel %vm2648_vm10, %v525_v34, 0.0  ;;  %v530_v45 = vsel %vm2647_vm11, %v526_v35, 0.0  ;;  %vm573_vm11 = vcmp.ge.s32.totalorder %v2137_v27, 3  ;;  %vm580_vm10 = vcmp.lt.s32.totalorder %v1997_v13, 2 }
  0xd7   : > { %vm2660_vm9 = vcmp.lt.s32.totalorder %v1997_v13, 126 }
  0xd8   : > { %v534_v32 = vpop.permute.xlu1 %533  ;;  %v532_v33 = vpop.permute.xlu0 %531 }
  0xd9   : > { %v536_v36 = vsel %vm2646_vm12, %v532_v33, %v534_v32  ;;  %v537_v37 = vsel %vm2646_vm12, %v534_v32, %v532_v33  ;;  %vm572_vm12 = vcmp.ge.s32.totalorder %v2134_v26, 3 }
  0xda   : > { %v540_v38 = vsel %vm2645_vm13, %v536_v36, 0.0  ;;  %v541_v39 = vsel %vm2644_vm14, %v537_v37, 0.0  ;;  %vm569_vm14 = vcmp.lt.s32.totalorder %v1997_v13, 3  ;;  %vm591_vm13 = vcmp.lt.s32.totalorder %v1997_v13, 1 }
  0xdb   : > { %v557_v48 = vadd.f32 %v540_v38, %v529_v44  ;;  %v558_v49 = vadd.f32 %v541_v39, %v530_v45 }
  0xdc   : > { %v545_v46 = vpop.permute.xlu1 %544  ;;  %v543_v47 = vpop.permute.xlu0 %542 }
  0xdd   : > { %v547_v50 = vsel %vm2659_vm15, %v543_v47, %v545_v46  ;;  %v548_v51 = vsel %vm2659_vm15, %v545_v46, %v543_v47  ;;  %vm2664_vm15 = vcmp.lt.s32.totalorder %v1997_v13, 125 }
  0xde   : > { %v551_v52 = vsel %vm2657_vm6, %v547_v50, 0.0  ;;  %v552_v53 = vsel %vm2656_vm5, %v548_v51, 0.0  ;;  %vm2667_vm5 = vcmp.lt.s32.totalorder %v2137_v27, 15  ;;  %vm2666_vm6 = vcmp.lt.s32.totalorder %v2134_v26, 14 }
  0xdf   : > { %v561_v56 = vadd.f32 %v557_v48, %v551_v52  ;;  %v562_v57 = vadd.f32 %v558_v49, %v552_v53 }
  0xe1   : > { %v2073_v58 = vadd.f32 %v561_v56, %v559_v54  ;;  %v2075_v59 = vadd.f32 %v562_v57, %v560_v55 }
  0xe3   : > { %567 = vrot.lane.b32.xlu1 %v2075_v59, %s1743_s25  ;;  %565 = vrot.lane.b32.xlu0 %v2073_v58, %s1743_s25 }
  0xe7   : > { %578 = vrot.lane.b32.xlu1 %v2075_v59, %s1744_s27  ;;  %576 = vrot.lane.b32.xlu0 %v2073_v58, %s1744_s27 }
  0xeb   : > { %589 = vrot.lane.b32.xlu1 %v2075_v59, %s1745_s30  ;;  %587 = vrot.lane.b32.xlu0 %v2073_v58, %s1745_s30 }
  0xef   : > { %600 = vrot.lane.b32.xlu1 %v2075_v59, %s1746_s24  ;;  %598 = vrot.lane.b32.xlu0 %v2073_v58, %s1746_s24 }
  0xf3   : > { %611 = vrot.lane.b32.xlu1 %v2075_v59, %s1747_s15  ;;  %609 = vrot.lane.b32.xlu0 %v2073_v58, %s1747_s15 }
  0xf7   : > { %662 = vperm.xlu1 %1539, %v645_v60   ;;  %620 = vrot.lane.b32.xlu0 %v2073_v58, %s1748_s19 }
  0xfb   : > { %622 = vrot.lane.b32.xlu1 %v2075_v59, %s1748_s19  ;;  %648 = vperm.xlu0 %1538, %v645_v60  }
  0xfc   : > { %1540 = vset.pattern.permute.xlu1 %v1749_v61 }
  0xff   : > { %678 = vperm.xlu1 %1540, %v645_v60   ;;  %1541 = vset.pattern.permute.xlu0 %v1750_v62 }
 0x100   : > { %694 = vperm.xlu0 %1541, %v645_v60  }
 0x103   : > { %1542 = vset.pattern.permute.xlu1 %v1751_v63 }
 0x104   : > { %710 = vperm.xlu1 %1542, %v645_v60   ;;  %1544 = vset.pattern.permute.xlu0 %v1752_v0 }
 0x105   : > { %742 = vperm.xlu0 %1544, %v645_v60  }
 0x108   : > { %1543 = vset.pattern.permute.xlu1 %v1753_v4 }
 0x109   : > { %726 = vperm.xlu1 %1543, %v645_v60   ;;  %1547 = vset.pattern.permute.xlu0 %v1742_v3 }
 0x10a   : > { %784 = vperm.xlu0 %1547, %v781_v1  }
 0x10d   : > { %1545 = vset.pattern.permute.xlu1 %v1754_v6 }
 0x10e   : > { %758 = vperm.xlu1 %1545, %v645_v60   ;;  %1549 = vset.pattern.permute.xlu0 %v1749_v61 }
 0x10f   : > { %848 = vperm.xlu0 %1549, %v814_v7  }
 0x112   : > { %1546 = vset.pattern.permute.xlu1 %v1742_v3 }
 0x113   : > { %776 = vperm.xlu1 %1546, %v773_v10   ;;  %1552 = vset.pattern.permute.xlu0 %v1753_v4 }
 0x114   : > { %882 = vperm.xlu0 %1552, %v814_v7  }
 0x117   : > { %817 = vperm.xlu1 %1546, %v814_v7  }
 0x118   : > { %1555 = vset.pattern.permute.xlu0 %v1755_v11 }
 0x119   : > { %924 = vperm.xlu0 %1555, %v814_v7  }
 0x11b   : > { %1548 = vset.pattern.permute.xlu1 %v1741_v2 }
 0x11c   : > { %834 = vperm.xlu1 %1548, %v814_v7  }
 0x11d   : > { %1558 = vset.pattern.permute.xlu0 %v1742_v3 }
 0x120   : > { %1550 = vset.pattern.permute.xlu1 %v1750_v62 }
 0x121   : > { %862 = vperm.xlu1 %1550, %v814_v7  }
 0x125   : > { %1551 = vset.pattern.permute.xlu1 %v1751_v63 }
 0x126   : > { %876 = vperm.xlu1 %1551, %v814_v7  }
 0x12a   : > { %1553 = vset.pattern.permute.xlu1 %v1752_v0 }
 0x12b   : > { %896 = vperm.xlu1 %1553, %v814_v7  }
 0x12f   : > { %1554 = vset.pattern.permute.xlu1 %v1754_v6 }
 0x130   : > { %910 = vperm.xlu1 %1554, %v814_v7  }
 0x134   : > { %1556 = vset.pattern.permute.xlu1 %v1756_v12 }
 0x135   : > { %941 = vperm.xlu1 %1556, %v814_v7  }
 0x139   : > { %1557 = vset.pattern.permute.xlu1 %v1757_v16 }
 0x13a   : > { %958 = vperm.xlu1 %1557, %v814_v7  }
 0x13e   : > { %1559 = vset.pattern.permute.xlu1 %v1742_v3 }
 0x155   : > { %v568_v17 = vpop.permute.xlu1 %567  ;;  %v566_v18 = vpop.permute.xlu0 %565 }
 0x156   : > { %v570_v36 = vsel %vm569_vm14, %v566_v18, %v568_v17  ;;  %v571_v37 = vsel %vm569_vm14, %v568_v17, %v566_v18 }
 0x157   : > { %v574_v47 = vsel %vm572_vm12, %v571_v37, 0.0  ;;  %v575_v48 = vsel %vm573_vm11, %v570_v36, 0.0 }
 0x159   : > { %v579_v19 = vpop.permute.xlu1 %578  ;;  %v577_v20 = vpop.permute.xlu0 %576 }
 0x15a   : > { %v581_v32 = vsel %vm580_vm10, %v577_v20, %v579_v19  ;;  %v582_v33 = vsel %vm580_vm10, %v579_v19, %v577_v20 }
 0x15b   : > { %v585_v41 = vsel %vm583_vm8, %v582_v33, 0.0  ;;  %v586_v42 = vsel %vm584_vm7, %v581_v32, 0.0 }
 0x15c   : > { %v631_v51 = vadd.f32 %v585_v41, %v574_v47  ;;  %v632_v52 = vadd.f32 %v586_v42, %v575_v48  ;;  %v2225_v48 = vsub.s32 6, %v1989_v5 }
 0x15d   : > { %v590_v21 = vpop.permute.xlu1 %589  ;;  %v588_v22 = vpop.permute.xlu0 %587 }
 0x15e   : > { %v592_v30 = vsel %vm591_vm13, %v588_v22, %v590_v21  ;;  %v593_v31 = vsel %vm591_vm13, %v590_v21, %v588_v22 }
 0x15f   : > { %v596_v38 = vsel %vm594_vm4, %v593_v31, 0.0  ;;  %v597_v39 = vsel %vm2661_vm3, %v592_v30, 0.0  ;;  %vm2662_vm3 = vcmp.lt.s32.totalorder %v2137_v27, 13  ;;  %v2214_v30 = vsub.s32 4, %v1989_v5 }
 0x160   : > { %v633_v49 = vadd.f32 %v596_v38, %v2073_v58  ;;  %v634_v50 = vadd.f32 %v597_v39, %v2075_v59 }
 0x161   : > { %v601_v24 = vpop.permute.xlu1 %600  ;;  %v599_v25 = vpop.permute.xlu0 %598 }
 0x162   : > { %v603_v43 = vsel %vm602_vm1, %v599_v25, %v601_v24  ;;  %v604_v44 = vsel %vm602_vm1, %v601_v24, %v599_v25  ;;  %v637_v10 = vadd.f32 %v633_v49, %v631_v51  ;;  %v638_v17 = vadd.f32 %v634_v50, %v632_v52 }
 0x163   : > { %v607_v53 = vsel %vm605_vm2, %v603_v43, 0.0  ;;  %v608_v54 = vsel %vm2667_vm5, %v604_v44, 0.0  ;;  %v2208_v24 = vsub.s32 2, %v1989_v5  ;;  %v2211_v25 = vsub.s32 3, %v1989_v5 }
 0x164   : > { %v2228_v49 = vsub.s32 5, %v1989_v5  ;;  %vm830_vm5 = vcmp.ge.s32.totalorder %v2137_v27, 4 }
 0x165   : > { %v612_v28 = vpop.permute.xlu1 %611  ;;  %v610_v29 = vpop.permute.xlu0 %609 }
 0x166   : > { %v614_v34 = vsel %vm2660_vm9, %v610_v29, %v612_v28  ;;  %v615_v35 = vsel %vm2660_vm9, %v612_v28, %v610_v29  ;;  %vm2663_vm9 = vcmp.lt.s32.totalorder %v2134_v26, 13 }
 0x167   : > { %v618_v45 = vsel %vm2666_vm6, %v614_v34, 0.0  ;;  %v619_v46 = vsel %vm2665_vm0, %v615_v35, 0.0  ;;  %vm811_vm0 = vcmp.ge.s32.totalorder %v2137_v27, 5  ;;  %vm829_vm6 = vcmp.ge.s32.totalorder %v2134_v26, 4 }
 0x168   : > { %v635_v57 = vadd.f32 %v618_v45, %v607_v53  ;;  %v636_v60 = vadd.f32 %v619_v46, %v608_v54 }
 0x169   : > { %v621_v55 = vpop.permute.xlu0 %620 }
 0x176   : > { %v663_v40 = vpop.permute.xlu1 %662 }
 0x17a   : > { %v623_v56 = vpop.permute.xlu1 %622  ;;  %v649_v23 = vpop.permute.xlu0 %648 }
 0x17b   : > { %v625_v1 = vsel %vm2664_vm15, %v621_v55, %v623_v56  ;;  %v626_v58 = vsel %vm2664_vm15, %v623_v56, %v621_v55  ;;  %vm810_vm15 = vcmp.ge.s32.totalorder %v2134_v26, 5 }
 0x17c   : > { %v629_v59 = vsel %vm2663_vm9, %v625_v1, 0.0  ;;  %v630_v7 = vsel %vm2662_vm3, %v626_v58, 0.0  ;;  %vm807_vm3 = vcmp.lt.s32.totalorder %v1997_v13, 5  ;;  %vm826_vm9 = vcmp.lt.s32.totalorder %v1997_v13, 4 }
 0x17d   : > { %v639_v18 = vadd.f32 %v635_v57, %v629_v59  ;;  %v640_v19 = vadd.f32 %v636_v60, %v630_v7 }
 0x17e   : > { %v679_v20 = vpop.permute.xlu1 %678 }
 0x17f   : > { %v641_v21 = vadd.f32 %v639_v18, %v637_v10  ;;  %v642_v22 = vadd.f32 %v640_v19, %v638_v17  ;;  %v695_v45 = vpop.permute.xlu0 %694 }
 0x181   : > { %v643_v28 = vmul.f32 0.020408163, %v641_v21  ;;  %v644_v29 = vmul.f32 0.020408163, %v642_v22 }
 0x183   : > { %v654_v31 = vrot.slane %v643_v28, %v1992_v8  ;;  %v658_v32 = vrot.slane %v644_v29, %v1992_v8  ;;  %v668_v33 = vrot.slane %v643_v28, %v1995_v9  ;;  %v672_v34 = vrot.slane %v644_v29, %v1995_v9  ;;  %v711_v35 = vpop.permute.xlu1 %710 }
 0x184   : > { %v684_v36 = vrot.slane %v643_v28, %v2208_v24  ;;  %v688_v37 = vrot.slane %v644_v29, %v2208_v24  ;;  %v700_v38 = vrot.slane %v643_v28, %v2211_v25  ;;  %v704_v39 = vrot.slane %v644_v29, %v2211_v25 }
 0x185   : > { %v673_v41 = vmul.f32 %v668_v33, %v663_v40  ;;  %v674_v42 = vmul.f32 %v672_v34, %v663_v40  ;;  %v659_v43 = vmul.f32 %v654_v31, %v649_v23  ;;  %v660_v44 = vmul.f32 %v658_v32, %v649_v23 }
 0x186   : > { %v689_v46 = vmul.f32 %v684_v36, %v679_v20  ;;  %v690_v47 = vmul.f32 %v688_v37, %v679_v20  ;;  %v716_v52 = vrot.slane %v643_v28, %v2214_v30  ;;  %v720_v53 = vrot.slane %v644_v29, %v2214_v30  ;;  %v743_v20 = vpop.permute.xlu0 %742 }
 0x187   : > { %v675_v50 = vadd.f32 %v673_v41, %v659_v43  ;;  %v676_v51 = vadd.f32 %v674_v42, %v660_v44  ;;  %v2233_v40 = vsub.s32 7, %v1989_v5  ;;  %v705_v57 = vmul.f32 %v700_v38, %v695_v45 }
 0x188   : > { %v727_v54 = vpop.permute.xlu1 %726  ;;  %v706_v60 = vmul.f32 %v704_v39, %v695_v45  ;;  %v748_v1 = vrot.slane %v643_v28, %v2225_v48  ;;  %v752_v58 = vrot.slane %v644_v29, %v2225_v48  ;;  %v732_v59 = vrot.slane %v643_v28, %v2228_v49 }
 0x189   : > { %v691_v55 = vadd.f32 %v689_v46, %v675_v50  ;;  %v692_v56 = vadd.f32 %v690_v47, %v676_v51  ;;  %v736_v7 = vrot.slane %v644_v29, %v2228_v49  ;;  %v721_v18 = vmul.f32 %v716_v52, %v711_v35 }
 0x18a   : > { %v722_v19 = vmul.f32 %v720_v53, %v711_v35  ;;  %v737_v22 = vmul.f32 %v732_v59, %v727_v54  ;;  %v753_v31 = vmul.f32 %v748_v1, %v743_v20  ;;  %v754_v32 = vmul.f32 %v752_v58, %v743_v20  ;;  %v785_v46 = vpop.permute.xlu0 %784  ;;  %v983_v59 = vld [vmem:[%s2621_s7] sm:$0xff] }
 0x18b   : > { %v707_v10 = vadd.f32 %v705_v57, %v691_v55  ;;  %v708_v17 = vadd.f32 %v706_v60, %v692_v56  ;;  %v738_v23 = vmul.f32 %v736_v7, %v727_v54  ;;  %v764_v37 = vrot.slane %v643_v28, %v2233_v40  ;;  %v1001_v7 = vld [vmem:[%s2622_s8] sm:$0xff] }
 0x18c   : > { %v768_v38 = vrot.slane %v644_v29, %v2233_v40 }
 0x18d   : > { %v723_v21 = vadd.f32 %v721_v18, %v707_v10  ;;  %v724_v5 = vadd.f32 %v722_v19, %v708_v17  ;;  %v759_v33 = vpop.permute.xlu1 %758 }
 0x18e   : > { %v769_v39 = vmul.f32 %v764_v37, %v759_v33  ;;  %v770_v41 = vmul.f32 %v768_v38, %v759_v33 }
 0x18f   : > { %v739_v34 = vadd.f32 %v737_v22, %v723_v21  ;;  %v740_v36 = vadd.f32 %v738_v23, %v724_v5  ;;  %v849_v21 = vpop.permute.xlu0 %848 }
 0x191   : > { %v755_v42 = vadd.f32 %v753_v31, %v739_v34  ;;  %v756_v43 = vadd.f32 %v754_v32, %v740_v36 }
 0x192   : > { %v777_v45 = vpop.permute.xlu1 %776 }
 0x193   : > { %v771_v44 = vadd.f32 %v769_v39, %v755_v42  ;;  %v772_v35 = vadd.f32 %v770_v41, %v756_v43  ;;  %v883_v22 = vpop.permute.xlu0 %882 }
 0x195   : > { %v779_v47 = vmul.f32 %v777_v45, %v771_v44  ;;  %v780_v50 = vmul.f32 %v777_v45, %v772_v35 }
 0x196   : > { %v818_v10 = vpop.permute.xlu1 %817 }
 0x197   : > { %v787_v51 = vadd.f32 %v785_v46, %v779_v47  ;;  %v788_v52 = vadd.f32 %v785_v46, %v780_v50 }
 0x198   : > { %v2303_v23 = vpop.permute.xlu0 %924 }
 0x199   : > { %v1437_v53 = vmul.f32 -1.442695, %v787_v51  ;;  %v1438_v54 = vmul.f32 -1.442695, %v788_v52 }
 0x19b   : > { %1581 = vpow2.f32 %v1437_v53  ;;  %v835_v17 = vpop.permute.xlu1 %834 }
 0x19c   : > { %1583 = vpow2.f32 %v1438_v54 }
 0x1a5   : > { %v1582_v55 = vpop.eup %1581 }
 0x1a6   : > { %v1584_v28 = vpop.eup %1583  ;;  %v795_v56 = vadd.f32 1.0, %v1582_v55 }
 0x1a7   : > { %v796_v29 = vadd.f32 1.0, %v1584_v28 }
 0x1a8   : > { %1585 = vrcp.f32 %v795_v56 }
 0x1a9   : > { %1587 = vrcp.f32 %v796_v29 }
 0x1b2   : > { %v1586_v57 = vpop.eup %1585 }
 0x1b3   : > { %v1588_v60 = vpop.eup %1587  ;;  %v2241_v1 = vmul.f32 %v1586_v57, %v787_v51 }
 0x1b4   : > { %v2243_v58 = vmul.f32 %v1588_v60, %v788_v52 }
 0x1b5   : > { %803 = vrot.lane.b32.xlu0 %v2241_v1, %s1758_s21  ;;  %v885_v47 = vmul.f32 %v883_v22, %v2241_v1 }
 0x1b6   : > { %805 = vrot.lane.b32.xlu1 %v2243_v58, %s1758_s21  ;;  %v886_v50 = vmul.f32 %v883_v22, %v2243_v58  ;;  %s2694_s21 = smov 96  }
 0x1b9   : > { %822 = vrot.lane.b32.xlu0 %v2241_v1, %s1759_s23 }
 0x1ba   : > { %824 = vrot.lane.b32.xlu1 %v2243_v58, %s1759_s23 }
 0x1bd   : > { %839 = vrot.lane.b32.xlu0 %v2241_v1, %s1743_s25 }
 0x1be   : > { %841 = vrot.lane.b32.xlu1 %v2243_v58, %s1743_s25  ;;  %s1760_s25 = smov 124  }
 0x1c1   : > { %853 = vrot.lane.b32.xlu0 %v2241_v1, %s1744_s27 }
 0x1c2   : > { %855 = vrot.lane.b32.xlu1 %v2243_v58, %s1744_s27  ;;  %s1761_s27 = smov 123  }
 0x1c5   : > { %867 = vrot.lane.b32.xlu0 %v2241_v1, %s1745_s30 }
 0x1c6   : > { %869 = vrot.lane.b32.xlu1 %v2243_v58, %s1745_s30 }
 0x1c9   : > { %887 = vrot.lane.b32.xlu0 %v2241_v1, %s1746_s24 }
 0x1ca   : > { %889 = vrot.lane.b32.xlu1 %v2243_v58, %s1746_s24 }
 0x1cd   : > { %901 = vrot.lane.b32.xlu0 %v2241_v1, %s1747_s15 }
 0x1ce   : > { %903 = vrot.lane.b32.xlu1 %v2243_v58, %s1747_s15 }
 0x1d1   : > { %915 = vrot.lane.b32.xlu0 %v2241_v1, %s1748_s19 }
 0x1d2   : > { %917 = vrot.lane.b32.xlu1 %v2243_v58, %s1748_s19  ;;  %s1762_s19 = smov 64  }
 0x1d5   : > { %929 = vrot.lane.b32.xlu0 %v2241_v1, %s1760_s25 }
 0x1d6   : > { %931 = vrot.lane.b32.xlu1 %v2243_v58, %s1760_s25  ;;  %s1331_s25 = scalar_lea.sflag [#allocation4], %s457_s20 }
 0x1d9   : > { %946 = vrot.lane.b32.xlu0 %v2241_v1, %s1761_s27 }
 0x1da   : > { %948 = vrot.lane.b32.xlu1 %v2243_v58, %s1761_s27 }
 0x1dd   : > { %986 = vperm.xlu0 %1558, %v983_v59  }
 0x1de   : > { %1004 = vperm.xlu1 %1559, %v1001_v7  }
 0x1e1   : > { %1561 = vset.pattern.permute.xlu0 %v1749_v61 }
 0x1e2   : > { %1035 = vperm.xlu0 %1561, %v1001_v7   ;;  %1560 = vset.pattern.permute.xlu1 %v1741_v2 }
 0x1e3   : > { %1021 = vperm.xlu1 %1560, %v1001_v7  }
 0x1e6   : > { %1564 = vset.pattern.permute.xlu0 %v1753_v4 }
 0x1e7   : > { %1069 = vperm.xlu0 %1564, %v1001_v7   ;;  %1562 = vset.pattern.permute.xlu1 %v1750_v62 }
 0x1e8   : > { %1049 = vperm.xlu1 %1562, %v1001_v7  }
 0x1eb   : > { %1567 = vset.pattern.permute.xlu0 %v1755_v11  ;;  %v863_v11 = vpop.permute.xlu1 %862 }
 0x1ec   : > { %1563 = vset.pattern.permute.xlu1 %v1751_v63  ;;  %1105 = vperm.xlu0 %1567, %v1001_v7  }
 0x1ed   : > { %1063 = vperm.xlu1 %1563, %v1001_v7  }
 0x1ef   : > { %v2295_v18 = vpop.permute.xlu1 %876 }
 0x1f0   : > { %1570 = vset.pattern.permute.xlu0 %v1742_v3 }
 0x1f1   : > { %1565 = vset.pattern.permute.xlu1 %v1752_v0 }
 0x1f2   : > { %1083 = vperm.xlu1 %1565, %v1001_v7  }
 0x1f3   : > { %v2297_v19 = vpop.permute.xlu1 %896 }
 0x1f6   : > { %1566 = vset.pattern.permute.xlu1 %v1754_v6 }
 0x1f7   : > { %1097 = vperm.xlu1 %1566, %v1001_v7   ;;  %v2299_v20 = vpop.permute.xlu1 %910 }
 0x1fb   : > { %1568 = vset.pattern.permute.xlu1 %v1756_v12  ;;  %v2301_v5 = vpop.permute.xlu1 %941 }
 0x1fc   : > { %1115 = vperm.xlu1 %1568, %v1001_v7  }
 0x1ff   : > { %v2305_v12 = vpop.permute.xlu1 %958 }
 0x200   : > { %1569 = vset.pattern.permute.xlu1 %v1757_v16 }
 0x201   : > { %1125 = vperm.xlu1 %1569, %v1001_v7  }
 0x205   : > { %1571 = vset.pattern.permute.xlu1 %v1742_v3 }
 0x227   : > { %v804_v31 = vpop.permute.xlu0 %803 }
 0x228   : > { %v806_v16 = vpop.permute.xlu1 %805 }
 0x229   : > { %v808_v44 = vsel %vm807_vm3, %v804_v31, %v806_v16  ;;  %v809_v35 = vsel %vm807_vm3, %v806_v16, %v804_v31  ;;  %vm2684_vm3 = vcmp.lt.s32.totalorder %v1997_v13, 126 }
 0x22a   : > { %v812_v29 = vsel %vm810_vm15, %v809_v35, 0.0  ;;  %v813_v57 = vsel %vm811_vm0, %v808_v44, 0.0  ;;  %vm2682_vm0 = vcmp.ge.s32.totalorder %v2137_v27, 1  ;;  %vm2691_vm15 = vcmp.lt.s32.totalorder %v2137_v27, 13 }
 0x22b   : > { %v823_v32 = vpop.permute.xlu0 %822 }
 0x22c   : > { %v825_v33 = vpop.permute.xlu1 %824 }
 0x22d   : > { %v827_v45 = vsel %vm826_vm9, %v823_v32, %v825_v33  ;;  %v828_v46 = vsel %vm826_vm9, %v825_v33, %v823_v32  ;;  %vm937_vm9 = vcmp.lt.s32.totalorder %v2137_v27, 12 }
 0x22e   : > { %v831_v60 = vsel %vm829_vm6, %v828_v46, 0.0  ;;  %v832_v1 = vsel %vm830_vm5, %v827_v45, 0.0  ;;  %vm2686_vm5 = vcmp.lt.s32.totalorder %v2134_v26, 14  ;;  %vm933_vm6 = vcmp.lt.s32.totalorder %v1997_v13, 124 }
 0x22f   : > { %v840_v34 = vpop.permute.xlu0 %839 }
 0x230   : > { %v842_v36 = vpop.permute.xlu1 %841 }
 0x231   : > { %v843_v51 = vsel %vm569_vm14, %v840_v34, %v842_v36  ;;  %v844_v52 = vsel %vm569_vm14, %v842_v36, %v840_v34  ;;  %v820_v36 = vmul.f32 %v818_v10, %v812_v29  ;;  %vm2690_vm14 = vcmp.lt.s32.totalorder %v2134_v26, 13 }
 0x232   : > { %v845_v59 = vsel %vm572_vm12, %v844_v52, 0.0  ;;  %v846_v7 = vsel %vm573_vm11, %v843_v51, 0.0  ;;  %vm954_vm11 = vcmp.lt.s32.totalorder %v2137_v27, 11  ;;  %vm2688_vm12 = vcmp.lt.s32.totalorder %v1997_v13, 125 }
 0x233   : > { %v854_v37 = vpop.permute.xlu0 %853 }
 0x234   : > { %v856_v38 = vpop.permute.xlu1 %855 }
 0x235   : > { %v857_v41 = vsel %vm580_vm10, %v854_v37, %v856_v38  ;;  %v858_v42 = vsel %vm580_vm10, %v856_v38, %v854_v37  ;;  %v821_v37 = vmul.f32 %v818_v10, %v813_v57  ;;  %v837_v38 = vmul.f32 %v835_v17, %v831_v60 }
 0x236   : > { %v859_v53 = vsel %vm583_vm8, %v858_v42, 0.0  ;;  %v860_v54 = vsel %vm584_vm7, %v857_v41, 0.0  ;;  %v851_v42 = vmul.f32 %v849_v21, %v845_v59  ;;  %vm950_vm7 = vcmp.lt.s32.totalorder %v1997_v13, 123 }
 0x237   : > { %v868_v39 = vpop.permute.xlu0 %867  ;;  %v865_v16 = vmul.f32 %v863_v11, %v859_v53  ;;  %v866_v32 = vmul.f32 %v863_v11, %v860_v54  ;;  %v963_v29 = vadd.f32 %v837_v38, %v820_v36  ;;  %vm936_vm8 = vcmp.lt.s32.totalorder %v2134_v26, 12 }
 0x238   : > { %v870_v43 = vpop.permute.xlu1 %869  ;;  %vm953_vm10 = vcmp.lt.s32.totalorder %v2134_v26, 11 }
 0x239   : > { %v871_v55 = vsel %vm591_vm13, %v868_v39, %v870_v43  ;;  %v872_v28 = vsel %vm591_vm13, %v870_v43, %v868_v39  ;;  %v838_v39 = vmul.f32 %v835_v17, %v832_v1  ;;  %v852_v43 = vmul.f32 %v849_v21, %v846_v7  ;;  %vm2689_vm13 = vmmov %vm2688_vm12 }
 0x23a   : > { %v873_v33 = vsel %vm594_vm4, %v872_v28, 0.0  ;;  %v874_v34 = vsel %vm2682_vm0, %v871_v55, 0.0  ;;  %vm2685_vm4 = vmmov %vm2684_vm3  ;;  %v965_v17 = vadd.f32 %v865_v16, %v851_v42  ;;  %vm997_vm0 = vcmp.ge.s32.totalorder %v2000_v14, 5 }
 0x23b   : > { %v888_v56 = vpop.permute.xlu0 %887  ;;  %v879_v45 = vmul.f32 %v2295_v18, %v873_v33  ;;  %v880_v46 = vmul.f32 %v2295_v18, %v874_v34  ;;  %v966_v52 = vadd.f32 %v866_v32, %v852_v43  ;;  %v964_v57 = vadd.f32 %v838_v39, %v821_v37 }
 0x23c   : > { %v890_v58 = vpop.permute.xlu1 %889 }
 0x23d   : > { %v891_v22 = vsel %vm602_vm1, %v888_v56, %v890_v58  ;;  %v892_v31 = vsel %vm602_vm1, %v890_v58, %v888_v56  ;;  %vm2683_vm1 = vcmp.lt.s32.totalorder %v2137_v27, 15  ;;  %v967_v1 = vadd.f32 %v885_v47, %v879_v45 }
 0x23e   : > { %v893_v44 = vsel %vm605_vm2, %v891_v22, 0.0  ;;  %v894_v35 = vsel %vm2683_vm1, %v892_v31, 0.0  ;;  %vm2687_vm2 = vcmp.lt.s32.totalorder %v2137_v27, 14  ;;  %v968_v58 = vadd.f32 %v886_v50, %v880_v46 }
 0x23f   : > { %v902_v41 = vpop.permute.xlu0 %901  ;;  %v899_v54 = vmul.f32 %v2297_v19, %v893_v44  ;;  %v900_v55 = vmul.f32 %v2297_v19, %v894_v35  ;;  %v973_v31 = vadd.f32 %v965_v17, %v963_v29  ;;  %v974_v16 = vadd.f32 %v966_v52, %v964_v57 }
 0x240   : > { %v904_v11 = vpop.permute.xlu1 %903  ;;  %vm998_vm1 = vcmp.ge.s32.totalorder %v2003_v15, 5 }
 0x241   : > { %v905_v51 = vsel %vm2684_vm3, %v902_v41, %v904_v11  ;;  %v906_v10 = vsel %vm2685_vm4, %v904_v11, %v902_v41  ;;  %vm2695_vm3 = vcmp.lt.s32.totalorder %v1997_v13, 80 }
 0x242   : > { %v907_v21 = vsel %vm2686_vm5, %v905_v51, 0.0  ;;  %v908_v53 = vsel %vm2687_vm2, %v906_v10, 0.0  ;;  %vm2696_vm4 = vmmov %vm2695_vm3  ;;  %vm1013_vm5 = vcmp.lt.s32.totalorder %v1997_v13, 64  ;;  %vm1016_vm2 = vcmp.ge.s32.totalorder %v2000_v14, 4 }
 0x243   : > { %v913_v18 = vmul.f32 %v2299_v20, %v907_v21  ;;  %v914_v28 = vmul.f32 %v2299_v20, %v908_v53  ;;  %v916_v56 = vpop.permute.xlu0 %915 }
 0x244   : > { %v918_v60 = vpop.permute.xlu1 %917 }
 0x245   : > { %v969_v59 = vadd.f32 %v913_v18, %v899_v54  ;;  %v970_v7 = vadd.f32 %v914_v28, %v900_v55  ;;  %v919_v37 = vsel %vm2688_vm12, %v916_v56, %v918_v60  ;;  %v920_v38 = vsel %vm2689_vm13, %v918_v60, %v916_v56 }
 0x246   : > { %v921_v35 = vsel %vm2690_vm14, %v919_v37, 0.0  ;;  %v922_v11 = vsel %vm2691_vm15, %v920_v38, 0.0  ;;  %vm2700_vm12 = vcmp.lt.s32.totalorder %v2003_v15, 13  ;;  %vm1120_vm13 = vcmp.lt.s32.totalorder %v2000_v14, 11 }
 0x247   : > { %v930_v22 = vpop.permute.xlu0 %929  ;;  %v975_v32 = vadd.f32 %v969_v59, %v967_v1  ;;  %v976_v33 = vadd.f32 %v970_v7, %v968_v58  ;;  %v927_v17 = vmul.f32 %v2303_v23, %v921_v35  ;;  %v928_v52 = vmul.f32 %v2303_v23, %v922_v11  ;;  %v1150_v23 = vld [vmem:[%s2623_s9] sm:$0xff] }
 0x248   : > { %v932_v34 = vpop.permute.xlu1 %931  ;;  %vm1121_vm14 = vcmp.lt.s32.totalorder %v2003_v15, 11  ;;  %vm2701_vm15 = vcmp.lt.s32.totalorder %v1997_v13, 16 }
 0x249   : > { %v979_v19 = vadd.f32 %v975_v32, %v973_v31  ;;  %v980_v41 = vadd.f32 %v976_v33, %v974_v16  ;;  %v934_v20 = vsel %vm933_vm6, %v930_v22, %v932_v34  ;;  %v935_v47 = vsel %vm933_vm6, %v932_v34, %v930_v22 }
 0x24a   : > { %v938_v43 = vsel %vm936_vm8, %v934_v20, 0.0  ;;  %v939_v44 = vsel %vm937_vm9, %v935_v47, 0.0  ;;  %vm1017_vm6 = vcmp.ge.s32.totalorder %v2003_v15, 4  ;;  %vm1111_vm8 = vcmp.lt.s32.totalorder %v2003_v15, 12 }
 0x24b   : > { %v947_v50 = vpop.permute.xlu0 %946  ;;  %v944_v51 = vmul.f32 %v2301_v5, %v938_v43  ;;  %v945_v10 = vmul.f32 %v2301_v5, %v939_v44  ;;  %v1158_v5 = vld [vmem:[%s2624_s10] sm:$0xff]  ;;  %vm2697_vm9 = vcmp.lt.s32.totalorder %v1997_v13, 32 }
 0x24c   : > { %v949_v36 = vpop.permute.xlu1 %948 }
 0x24d   : > { %v951_v39 = vsel %vm950_vm7, %v947_v50, %v949_v36  ;;  %v952_v42 = vsel %vm950_vm7, %v949_v36, %v947_v50  ;;  %v971_v54 = vadd.f32 %v944_v51, %v927_v17  ;;  %v972_v26 = vadd.f32 %v945_v10, %v928_v52 }
 0x24e   : > { %v955_v45 = vsel %vm953_vm10, %v951_v39, 0.0  ;;  %v956_v46 = vsel %vm954_vm11, %v952_v42, 0.0  ;;  %vm1110_vm7 = vcmp.lt.s32.totalorder %v2000_v14, 12  ;;  %vm2698_vm10 = vmmov %vm2697_vm9  ;;  %vm2699_vm11 = vcmp.lt.s32.totalorder %v2000_v14, 13 }
 0x24f   : > { %v961_v21 = vmul.f32 %v2305_v12, %v955_v45  ;;  %v962_v53 = vmul.f32 %v2305_v12, %v956_v46  ;;  %v1286_v12 = vld [vmem:[%s2625_s11] sm:$0xff] }
 0x251   : > { %v977_v55 = vadd.f32 %v971_v54, %v961_v21  ;;  %v978_v18 = vadd.f32 %v972_v26, %v962_v53 }
 0x253   : > { %v981_v27 = vadd.f32 %v979_v19, %v977_v55  ;;  %v982_v28 = vadd.f32 %v980_v41, %v978_v18 }
 0x25c   : > { %v987_v56 = vpop.permute.xlu0 %986 }
 0x25d   : > { %v2389_v29 = vadd.f32 %v987_v56, %v981_v27  ;;  %v2391_v57 = vadd.f32 %v987_v56, %v982_v28 }
 0x25f   : > { %993 = vrot.lane.b32.xlu1 %v2391_v57, %s1740_s22  ;;  %991 = vrot.lane.b32.xlu0 %v2389_v29, %s1740_s22  ;;  %s2693_s22 = smov 112  }
 0x263   : > { %1011 = vrot.lane.b32.xlu1 %v2391_v57, %s1762_s19  ;;  %1009 = vrot.lane.b32.xlu0 %v2389_v29, %s1762_s19  ;;  %s1434_s19 = sshll.u32 %s457_s20, 4 }
 0x267   : > { %1028 = vrot.lane.b32.xlu1 %v2391_v57, %s1736_s16  ;;  %1026 = vrot.lane.b32.xlu0 %v2389_v29, %s1736_s16 }
 0x26b   : > { %1042 = vrot.lane.b32.xlu1 %v2391_v57, %s1735_s17  ;;  %1040 = vrot.lane.b32.xlu0 %v2389_v29, %s1735_s17 }
 0x26f   : > { %1056 = vrot.lane.b32.xlu1 %v2391_v57, %s2692_s14  ;;  %1054 = vrot.lane.b32.xlu0 %v2389_v29, %s2692_s14  ;;  %s1449_s14 = sshll.u32 %s1855_s29, 8  ;;  %s1763_s29 = smov [#allocation7]  }
 0x270   : > { %s2572_s23 = scalar_lea.hbm %s2627_s13, %s1449_s14  ;;  %s1665_s30 = sshll.u32 %s1763_s29, 4  ;;  %s1666_s30 = int_to_ptr.vmem [resolvable:$false] %s1665_s30 }
 0x271   : > { %s1667_s24 = scalar_lea.vmem %s1666_s30, 512 }
 0x273   : > { %1076 = vrot.lane.b32.xlu1 %v2391_v57, %s2693_s22  ;;  %1074 = vrot.lane.b32.xlu0 %v2389_v29, %s2693_s22  ;;  %s459_s22 = scalar_lea.vmem [#allocation7], %s1434_s19 }
 0x277   : > { %1090 = vrot.lane.b32.xlu1 %v2391_v57, %s2694_s21  ;;  %1088 = vrot.lane.b32.xlu0 %v2389_v29, %s2694_s21  ;;  %s1345_s21 = sshll.u32 %s459_s22, 4  ;;  %s2574_s21 = int_to_ptr.vmem [resolvable:$true] %s1345_s21 }
 0x278   : > { %s1661_s27 = scalar_lea.vmem %s2574_s21, 256  ;;  %p1668_p4 = scmp.lt.s32.totalorder %s2574_s21, %s1666_s30 }
 0x279   : > { %p1662_p12 = scmp.ne.s32.totalorder %s2574_s21, %s1661_s27  ;;  %p1669_p7 = scmp.lt.s32.totalorder %s1667_s24, %s1661_s27 }
 0x27b   : > { %1161 = vperm.xlu1 %1571, %v1158_v5   ;;  %1153 = vperm.xlu0 %1570, %v1150_v23   ;;  %p1663_p2 = pnand %p1662_p12, %p2719_p1  ;;  %p1670_p8 = por %p1669_p7, %p1668_p4 }
 0x27d   : > { %p1664_p3 = pneg %p1663_p2 }
 0x27f   : > { %1572 = vset.pattern.permute.xlu1 %v1741_v2  ;;  %1573 = vset.pattern.permute.xlu0 %v1749_v61  ;;  %v1294_v2 = vld [vmem:[%s2626_s12] sm:$0xff]  ;;  %v2440_v61 = vpop.permute.xlu1 %1004  ;;  %p1671_p11 = pnand %p1670_p8, %p1664_p3 }
 0x280   : > { %1175 = vperm.xlu1 %1572, %v1158_v5   ;;  %1191 = vperm.xlu0 %1573, %v1158_v5  }
 0x284   : > { %1574 = vset.pattern.permute.xlu1 %v1750_v62  ;;  %1576 = vset.pattern.permute.xlu0 %v1753_v4  ;;  %v2442_v62 = vpop.permute.xlu1 %1021 }
 0x285   : > { %1207 = vperm.xlu1 %1574, %v1158_v5   ;;  %1239 = vperm.xlu0 %1576, %v1158_v5  }
 0x289   : > { %1575 = vset.pattern.permute.xlu1 %v1751_v63  ;;  %1579 = vset.pattern.permute.xlu0 %v1742_v3  ;;  %v2444_v63 = vpop.permute.xlu1 %1049 }
 0x28a   : > { %1223 = vperm.xlu1 %1575, %v1158_v5   ;;  %1289 = vperm.xlu0 %1579, %v1286_v12  }
 0x28d   : > { %v2446_v4 = vpop.permute.xlu1 %1063 }
 0x28e   : > { %1577 = vset.pattern.permute.xlu1 %v1752_v0 }
 0x28f   : > { %1255 = vperm.xlu1 %1577, %v1158_v5  }
 0x291   : > { %v2448_v0 = vpop.permute.xlu1 %1083 }
 0x293   : > { %1578 = vset.pattern.permute.xlu1 %v1754_v6  ;;  %v2452_v6 = vpop.permute.xlu0 %1035 }
 0x294   : > { %1271 = vperm.xlu1 %1578, %v1158_v5  }
 0x295   : > { %v2450_v60 = vpop.permute.xlu1 %1097 }
 0x297   : > { %v1070_v58 = vpop.permute.xlu0 %1069 }
 0x298   : > { %1580 = vset.pattern.permute.xlu1 %v1742_v3  ;;  %v1072_v36 = vmul.f32 %v1070_v58, %v2389_v29  ;;  %v1073_v37 = vmul.f32 %v1070_v58, %v2391_v57 }
 0x299   : > { %1297 = vperm.xlu1 %1580, %v1294_v2   ;;  %v2454_v1 = vpop.permute.xlu1 %1115 }
 0x29b   : > { %v2458_v3 = vpop.permute.xlu0 %1105 }
 0x29d   : > { %v2456_v59 = vpop.permute.xlu1 %1125 }
 0x2d1   : > { %v994_v7 = vpop.permute.xlu1 %993  ;;  %v992_v22 = vpop.permute.xlu0 %991 }
 0x2d2   : > { %v995_v41 = vsel %vm2695_vm3, %v992_v22, %v994_v7  ;;  %v996_v20 = vsel %vm2696_vm4, %v994_v7, %v992_v22  ;;  %vm2705_vm4 = vcmp.lt.s32.totalorder %v1997_v13, 112 }
 0x2d3   : > { %v999_v38 = vsel %vm997_vm0, %v996_v20, 0.0  ;;  %v1000_v39 = vsel %vm998_vm1, %v995_v41, 0.0  ;;  %v1102_v11 = vsel %vm2699_vm11, %v995_v41, 0.0  ;;  %v1103_v45 = vsel %vm2700_vm12, %v996_v20, 0.0  ;;  %vm2702_vm0 = vmmov %vm2701_vm15 }
 0x2d4   : > { %vm2703_vm1 = vcmp.lt.s32.totalorder %v1997_v13, 48  ;;  %vm2709_vm11 = vcmp.ge.s32.totalorder %v2000_v14, 1  ;;  %vm2712_vm12 = vcmp.ge.s32.totalorder %v2003_v15, 3 }
 0x2d5   : > { %v1012_v31 = vpop.permute.xlu1 %1011  ;;  %v1010_v16 = vpop.permute.xlu0 %1009  ;;  %vm2704_vm3 = vmmov %vm2703_vm1 }
 0x2d6   : > { %v1014_v42 = vsel %vm1013_vm5, %v1010_v16, %v1012_v31  ;;  %v1015_v43 = vsel %vm1013_vm5, %v1012_v31, %v1010_v16  ;;  %vm2706_vm5 = vmmov %vm2705_vm4 }
 0x2d7   : > { %v1018_v26 = vsel %vm1016_vm2, %v1015_v43, 0.0  ;;  %v1019_v55 = vsel %vm1017_vm6, %v1014_v42, 0.0  ;;  %v1112_v28 = vsel %vm1110_vm7, %v1014_v42, 0.0  ;;  %v1113_v56 = vsel %vm1111_vm8, %v1015_v43, 0.0 }
 0x2d8   : > { %vm2710_vm2 = vcmp.ge.s32.totalorder %v2003_v15, 1  ;;  %vm2711_vm6 = vcmp.ge.s32.totalorder %v2000_v14, 3  ;;  %vm2714_vm7 = vcmp.lt.s32.totalorder %v2003_v15, 15  ;;  %vm2715_vm8 = vcmp.lt.s32.totalorder %v1997_v13, 96 }
 0x2d9   : > { %v1029_v32 = vpop.permute.xlu1 %1028  ;;  %v1027_v33 = vpop.permute.xlu0 %1026  ;;  %v1024_v13 = vmul.f32 %v2442_v62, %v1018_v26  ;;  %v1025_v42 = vmul.f32 %v2442_v62, %v1019_v55 }
 0x2da   : > { %v1030_v52 = vsel %vm2703_vm1, %v1027_v33, %v1029_v32  ;;  %v1031_v21 = vsel %vm2704_vm3, %v1029_v32, %v1027_v33  ;;  %vm2717_vm1 = vcmp.lt.s32.totalorder %v2000_v14, 14  ;;  %vm2718_vm3 = vcmp.lt.s32.totalorder %v2003_v15, 14 }
 0x2db   : > { %v1032_v5 = vsel %vm2711_vm6, %v1031_v21, 0.0  ;;  %v1033_v23 = vsel %vm2712_vm12, %v1030_v52, 0.0  ;;  %v1122_v62 = vsel %vm1120_vm13, %v1030_v52, 0.0 }
 0x2dc   : > { %v1039_v43 = vmul.f32 %v2452_v6, %v1033_v23 }
 0x2dd   : > { %v1043_v34 = vpop.permute.xlu1 %1042  ;;  %v1041_v19 = vpop.permute.xlu0 %1040 }
 0x2de   : > { %v1044_v44 = vsel %vm2697_vm9, %v1041_v19, %v1043_v34  ;;  %v1045_v35 = vsel %vm2698_vm10, %v1043_v34, %v1041_v19  ;;  %vm2707_vm9 = vcmp.ge.s32.totalorder %v2000_v14, 2  ;;  %vm2708_vm10 = vcmp.ge.s32.totalorder %v2003_v15, 2 }
 0x2df   : > { %v1046_v18 = vsel %vm2707_vm9, %v1045_v35, 0.0  ;;  %v1047_v27 = vsel %vm2708_vm10, %v1044_v44, 0.0  ;;  %v1007_v44 = vmul.f32 %v2440_v61, %v999_v38  ;;  %v1008_v35 = vmul.f32 %v2440_v61, %v1000_v39 }
 0x2e0   : > { %v1052_v22 = vmul.f32 %v2444_v63, %v1046_v18  ;;  %v1053_v31 = vmul.f32 %v2444_v63, %v1047_v27  ;;  %v1108_v39 = vmul.f32 %v2458_v3, %v1102_v11  ;;  %v1109_v18 = vmul.f32 %v2458_v3, %v1103_v45 }
 0x2e1   : > { %v1057_v47 = vpop.permute.xlu1 %1056  ;;  %v1055_v50 = vpop.permute.xlu0 %1054  ;;  %v1130_v26 = vadd.f32 %v1024_v13, %v1007_v44  ;;  %v1131_v38 = vadd.f32 %v1025_v42, %v1008_v35 }
 0x2e2   : > { %v1058_v46 = vsel %vm2701_vm15, %v1055_v50, %v1057_v47  ;;  %v1059_v51 = vsel %vm2702_vm0, %v1057_v47, %v1055_v50  ;;  %vm2713_vm15 = vcmp.lt.s32.totalorder %v2000_v14, 15  ;;  %vm2716_vm0 = vmmov %vm2715_vm8 }
 0x2e3   : > { %v1060_v29 = vsel %vm2709_vm11, %v1059_v51, 0.0  ;;  %v1061_v57 = vsel %vm2710_vm2, %v1058_v46, 0.0 }
 0x2e4   : > { %v1066_v33 = vmul.f32 %v2446_v4, %v1060_v29  ;;  %v1067_v34 = vmul.f32 %v2446_v4, %v1061_v57  ;;  %v1038_v4 = vmul.f32 %v2452_v6, %v1032_v5  ;;  %v1123_v6 = vsel %vm1121_vm14, %v1031_v21, 0.0 }
 0x2e5   : > { %v1077_v10 = vpop.permute.xlu1 %1076  ;;  %v1075_v17 = vpop.permute.xlu0 %1074 }
 0x2e6   : > { %v1078_v53 = vsel %vm2705_vm4, %v1075_v17, %v1077_v10  ;;  %v1079_v54 = vsel %vm2706_vm5, %v1077_v10, %v1075_v17  ;;  %v1132_v10 = vadd.f32 %v1052_v22, %v1038_v4  ;;  %v1134_v17 = vadd.f32 %v1072_v36, %v1066_v33 }
 0x2e7   : > { %v1080_v12 = vsel %vm2713_vm15, %v1078_v53, 0.0  ;;  %v1081_v2 = vsel %vm2714_vm7, %v1079_v54, 0.0  ;;  %v1135_v53 = vadd.f32 %v1073_v37, %v1067_v34  ;;  %v1119_v54 = vmul.f32 %v2454_v1, %v1113_v56 }
 0x2e8   : > { %v1086_v20 = vmul.f32 %v2448_v0, %v1080_v12  ;;  %v1087_v63 = vmul.f32 %v2448_v0, %v1081_v2  ;;  %v1133_v0 = vadd.f32 %v1053_v31, %v1039_v43  ;;  %v1128_v36 = vmul.f32 %v2456_v59, %v1122_v62 }
 0x2e9   : > { %v1091_v58 = vpop.permute.xlu1 %1090  ;;  %v1089_v7 = vpop.permute.xlu0 %1088  ;;  %v1129_v37 = vmul.f32 %v2456_v59, %v1123_v6  ;;  %v1140_v27 = vadd.f32 %v1132_v10, %v1130_v26  ;;  %v1139_v14 = vadd.f32 %v1119_v54, %v1109_v18 }
 0x2ea   : > { %v1092_v16 = vsel %vm2715_vm8, %v1089_v7, %v1091_v58  ;;  %v1093_v32 = vsel %vm2716_vm0, %v1091_v58, %v1089_v7 }
 0x2eb   : > { %v1094_v19 = vsel %vm2717_vm1, %v1092_v16, 0.0  ;;  %v1095_v41 = vsel %vm2718_vm3, %v1093_v32, 0.0  ;;  %v1145_v21 = vadd.f32 %v1139_v14, %v1129_v37 }
 0x2ec   : > { %v1100_v47 = vmul.f32 %v2450_v60, %v1094_v19  ;;  %v1101_v50 = vmul.f32 %v2450_v60, %v1095_v41  ;;  %v1118_v60 = vmul.f32 %v2454_v1, %v1112_v28  ;;  %v1141_v1 = vadd.f32 %v1133_v0, %v1131_v38 }
 0x2ee   : > { %v1136_v46 = vadd.f32 %v1100_v47, %v1086_v20  ;;  %v1137_v51 = vadd.f32 %v1101_v50, %v1087_v63  ;;  %v1138_v28 = vadd.f32 %v1118_v60, %v1108_v39 }
 0x2f0   : > { %v1142_v55 = vadd.f32 %v1136_v46, %v1134_v17  ;;  %v1143_v61 = vadd.f32 %v1137_v51, %v1135_v53  ;;  %v1144_v15 = vadd.f32 %v1138_v28, %v1128_v36 }
 0x2f2   : > { %v1146_v52 = vadd.f32 %v1142_v55, %v1140_v27  ;;  %v1147_v56 = vadd.f32 %v1143_v61, %v1141_v1 }
 0x2f4   : > { %v1148_v29 = vadd.f32 %v1146_v52, %v1144_v15  ;;  %v1149_v57 = vadd.f32 %v1147_v56, %v1145_v21 }
 0x2fa   : > { %v1162_v5 = vpop.permute.xlu1 %1161  ;;  %v1154_v23 = vpop.permute.xlu0 %1153 }
 0x2fb   : > { %v1156_v12 = vadd.f32 %v1154_v23, %v1148_v29  ;;  %v1157_v11 = vadd.f32 %v1154_v23, %v1149_v57 }
 0x2fd   : > { %v1167_v3 = vrot.slane %v1156_v12, %v1992_v8  ;;  %v1171_v45 = vrot.slane %v1157_v11, %v1992_v8  ;;  %v1181_v59 = vrot.slane %v1156_v12, %v1995_v9  ;;  %v1185_v2 = vrot.slane %v1157_v11, %v1995_v9 }
 0x2fe   : > { %v1197_v32 = vrot.slane %v1156_v12, %v2208_v24  ;;  %v1201_v33 = vrot.slane %v1157_v11, %v2208_v24  ;;  %v1213_v8 = vrot.slane %v1156_v12, %v2211_v25  ;;  %v1217_v50 = vrot.slane %v1157_v11, %v2211_v25 }
 0x2ff   : > { %v1176_v58 = vpop.permute.xlu1 %1175  ;;  %v1172_v7 = vmul.f32 %v1167_v3, %v1162_v5  ;;  %v1173_v22 = vmul.f32 %v1171_v45, %v1162_v5  ;;  %v1192_v34 = vpop.permute.xlu0 %1191  ;;  %v1229_v43 = vrot.slane %v1156_v12, %v2214_v30  ;;  %v1233_v44 = vrot.slane %v1157_v11, %v2214_v30 }
 0x300   : > { %v1186_v31 = vmul.f32 %v1181_v59, %v1176_v58  ;;  %v1187_v16 = vmul.f32 %v1185_v2, %v1176_v58  ;;  %v1202_v20 = vmul.f32 %v1197_v32, %v1192_v34  ;;  %v1203_v63 = vmul.f32 %v1201_v33, %v1192_v34 }
 0x301   : > { %v1245_v17 = vrot.slane %v1156_v12, %v2228_v49  ;;  %v1249_v53 = vrot.slane %v1157_v11, %v2228_v49  ;;  %v1261_v26 = vrot.slane %v1156_v12, %v2225_v48  ;;  %v1265_v38 = vrot.slane %v1157_v11, %v2225_v48 }
 0x302   : > { %v1188_v19 = vadd.f32 %v1186_v31, %v1172_v7  ;;  %v1189_v41 = vadd.f32 %v1187_v16, %v1173_v22  ;;  %v1277_v18 = vrot.slane %v1156_v12, %v2233_v40  ;;  %v1281_v36 = vrot.slane %v1157_v11, %v2233_v40 }
 0x304   : > { %v1208_v47 = vpop.permute.xlu1 %1207  ;;  %v1204_v9 = vadd.f32 %v1202_v20, %v1188_v19  ;;  %v1205_v13 = vadd.f32 %v1203_v63, %v1189_v41  ;;  %v1240_v0 = vpop.permute.xlu0 %1239 }
 0x305   : > { %v1218_v42 = vmul.f32 %v1213_v8, %v1208_v47  ;;  %v1219_v4 = vmul.f32 %v1217_v50, %v1208_v47  ;;  %v1250_v54 = vmul.f32 %v1245_v17, %v1240_v0  ;;  %v1251_v62 = vmul.f32 %v1249_v53, %v1240_v0 }
 0x307   : > { %v1220_v24 = vadd.f32 %v1218_v42, %v1204_v9  ;;  %v1221_v46 = vadd.f32 %v1219_v4, %v1205_v13 }
 0x309   : > { %v1224_v35 = vpop.permute.xlu1 %1223  ;;  %v1290_v14 = vpop.permute.xlu0 %1289 }
 0x30a   : > { %v1234_v51 = vmul.f32 %v1229_v43, %v1224_v35  ;;  %v1235_v10 = vmul.f32 %v1233_v44, %v1224_v35 }
 0x30c   : > { %v1236_v60 = vadd.f32 %v1234_v51, %v1220_v24  ;;  %v1237_v25 = vadd.f32 %v1235_v10, %v1221_v46 }
 0x30e   : > { %v1256_v6 = vpop.permute.xlu1 %1255  ;;  %v1252_v30 = vadd.f32 %v1250_v54, %v1236_v60  ;;  %v1253_v55 = vadd.f32 %v1251_v62, %v1237_v25 }
 0x30f   : > { %v1266_v61 = vmul.f32 %v1261_v26, %v1256_v6  ;;  %v1267_v39 = vmul.f32 %v1265_v38, %v1256_v6 }
 0x311   : > { %v1268_v27 = vadd.f32 %v1266_v61, %v1252_v30  ;;  %v1269_v49 = vadd.f32 %v1267_v39, %v1253_v55 }
 0x313   : > { %v1272_v37 = vpop.permute.xlu1 %1271 }
 0x314   : > { %v1282_v1 = vmul.f32 %v1277_v18, %v1272_v37  ;;  %v1283_v28 = vmul.f32 %v1281_v36, %v1272_v37 }
 0x316   : > { %v1284_v52 = vadd.f32 %v1282_v1, %v1268_v27  ;;  %v1285_v56 = vadd.f32 %v1283_v28, %v1269_v49 }
 0x318   : > { %v1292_v15 = vmul.f32 %v1290_v14, %v1284_v52  ;;  %v1293_v21 = vmul.f32 %v1290_v14, %v1285_v56  ;;  %v1298_v29 = vpop.permute.xlu1 %1297 }
 0x31a   : > { %v1300_v48 = vadd.f32 %v1298_v29, %v1292_v15  ;;  %v1301_v57 = vadd.f32 %v1298_v29, %v1293_v21 }
 0x31c   : > { %v1439_v5 = vmul.f32 -1.442695, %v1300_v48  ;;  %v1440_v23 = vmul.f32 -1.442695, %v1301_v57 }
 0x31e   : > { %1589 = vpow2.f32 %v1439_v5 }
 0x31f   : > { %1591 = vpow2.f32 %v1440_v23 }
 0x328   : > { %v1590_v12 = vpop.eup %1589 }
 0x329   : > { %v1592_v3 = vpop.eup %1591  ;;  %v1308_v40 = vadd.f32 1.0, %v1590_v12 }
 0x32a   : > { %v1309_v11 = vadd.f32 1.0, %v1592_v3 }
 0x32b   : > { %1593 = vrcp.f32 %v1308_v40 }
 0x32c   : > { %1595 = vrcp.f32 %v1309_v11 }
 0x335   : > { %v1594_v45 = vpop.eup %1593 }
 0x336   : > { %v1596_v59 = vpop.eup %1595  ;;  %v1314_v2 = vmul.f32 %v1594_v45, %v1300_v48 }
 0x337   : > { %v1315_v58 = vmul.f32 %v1596_v59, %v1301_v57 }
 0x338   : > { %v1441_v7 = vmul.f32 -1.442695, %v1314_v2 }
 0x339   : > { %v1442_v22 = vmul.f32 -1.442695, %v1315_v58 }
 0x33a   : > { %1597 = vpow2.f32 %v1441_v7 }
 0x33b   : > { %1599 = vpow2.f32 %v1442_v22 }
 0x344   : > { %v1598_v31 = vpop.eup %1597 }
 0x345   : > { %v1600_v16 = vpop.eup %1599  ;;  %v1322_v32 = vadd.f32 1.0, %v1598_v31 }
 0x346   : > { %v1323_v33 = vadd.f32 1.0, %v1600_v16 }
 0x347   : > { %1601 = vrcp.f32 %v1322_v32 }
 0x348   : > { %1603 = vrcp.f32 %v1323_v33 }
 0x351   : > { %v1602_v34 = vpop.eup %1601 }
 0x352   : > { %v1604_v19 = vpop.eup %1603  ;;  %1328 = vst [vmem:[%s459_s22] sm:$0xff] %v1602_v34 }
 0x353   : > { %1329 = vst [vmem:[%s459_s22 + $0x8] sm:$0xff] %v1604_v19 }
 0x354   : > { %1674 = shalt.err (!%p1671_p11)
}
 0x355   : > { %s1675_s15 = scalar_lea.hbm %s2572_s23, 256  ;;  %s1679_s14 = scalar_lea.hbm %s2627_s13, 512 }
 0x356   : > { %p1676_p13 = scmp.ne.s32.totalorder %s2572_s23, %s1675_s15  ;;  %p1680_p5 = scmp.lt.u32.totalorder %s2572_s23, %s2627_s13 }
 0x357   : > { %p1681_p9 = scmp.lt.u32.totalorder %s1679_s14, %s1675_s15  ;;  %p1683_p12 = scmp.lt.u32.totalorder %s1675_s15, %s2572_s23 }
 0x358   : > { %p1677_p6 = pnand %p1676_p13, %p2719_p1 }
 0x359   : > { %p1682_p10 = por %p1681_p9, %p1680_p5 }
 0x35a   : > { %p1678_p0 = pneg %p1677_p6 }
 0x35b   : > { %p1684_p2 = por %p1683_p12, %p1682_p10 }
 0x35d   : > { %p1685_p3 = pnand %p1684_p2, %p1678_p0 }
 0x35f   : > { %1688 = shalt.err (!%p1685_p3)
}
 0x360   : > { %1458 = dma.vmem_to_hbm [thread:$0]  (%p2719_p1), %s2574_s21, 256, %s2572_s23, %s1331_s25  }
 0x361 PF: > { %s2720_s17 = sld [smem:[#allocation11_spill]]  ;;  %s2721_s27 = sld [smem:[#allocation15_spill]] }
 0x362   : > { %p1475_p4 = scmp.ge.s32.totalorder %s1731_s28, 2 }
 0x367   : > { %s1357_s29 = sand.u32 1, %s2720_s17   ;;  %p2722_p7 = scmp.ne.s32.totalorder %s2721_s27, 0 }
 0x368   : > { %s1358_s30 = scalar_lea.sflag [#allocation4], %s1357_s29 }
 0x369   : > { %p1468_p8 = pnand %p1475_p4, %p2722_p7 }
 0x36b   : > { %1714 = dma.done.wait (!%p1468_p8), %s1358_s30, 256  }
 0x36c   : > { %1716 = vsyncadd (!%p1468_p8), %s1358_s30, 4294967040  ;;  %s2723_s28 = sld [smem:[#allocation13_spill]]  ;;  %s2724_s24 = sld [smem:[#allocation12_spill]] }
 0x36d   : > { %s2725_s27 = sld [smem:[#allocation14_spill]]  ;;  %s2726_s25 = smov %s1723_s26 }
 0x372   : > { %p25_p11 = scmp.ge.s32.totalorder %s2723_s28, 4   ;;  %s2727_s26 = smov %s2724_s24 }
 0x374   :  { %27 = sbr.rel (!%p25_p11) target bundleno = 5 (0x5), region = 116 }
 0x37b   :  { %1363 = vsyncpa [#allocation3], 1 }
 0x37c   :  { %1365 = vsyncpa [#allocation3 + $0x1], 1 }
 0x37d   :  { %1366 = vsyncpa [#allocation6], 1 }
 0x37e   :  { %1367 = vsyncpa [#allocation4], 1 }
 0x37f   :  { %1369 = vsyncpa [#allocation4 + $0x1], 1 }

</bundles_post_ra>
